<compile_context>
chip_gen: v7x
topology: tpu7x:2x2x1
jax: 0.10.0
libtpu: 0.0.40
codegen_flags: <defaults>
</compile_context>

<pallas_src>
import functools

import jax
import jax.numpy as jnp
from jax import lax
from jax.experimental import pallas as pl
from jax.experimental.pallas import tpu as pltpu

_LANES = 128      # rows per row-group (lane-dense per-row layout)
_SUBLANES = 8     # sublane granularity for the (groups, 128) target tile


def _cdiv(a, b):
    return -(-a // b)


def _contrastive_loss_kernel(o1_ref, o2_ref, tgt_ref, out_ref, *,
                             block_nb, steps_per_core, batch, margin, eps):
    c = pl.program_id(0)          # partial-sum / core index ("parallel")
    s = pl.program_id(1)          # reduction step ("arbitrary")

    @pl.when(s == 0)
    def _():
        out_ref[...] = jnp.zeros_like(out_ref)

    # Stream in native dtype (bf16 halves HBM bytes); accumulate in f32.
    o1 = o1_ref[...].astype(jnp.float32)                 # (block_nb, 128, D)
    o2 = o2_ref[...].astype(jnp.float32)
    diff = o2 - o1
    # Per-row squared L2 distance; reduce over the feature (lane) axis so all
    # per-row quantities stay lane-dense: (block_nb, 128).
    distances = jnp.sum(diff * diff, axis=-1)

    tgt = tgt_ref[...]                                    # (block_nb, 128) f32
    hinge = jnp.maximum(margin - jnp.sqrt(distances + eps), 0.0)
    losses = 0.5 * (tgt * distances + (1.0 - tgt) * hinge * hinge)

    # Mask padded tail rows.  Inputs are zero-padded, but an all-zero row still
    # gives hinge ~ margin, so select 0.0 explicitly (do NOT turn this into a
    # multiply-by-mask).
    base_row = (c * steps_per_core + s) * block_nb * _LANES
    gid = lax.broadcasted_iota(jnp.int32, (block_nb, _LANES), 0)
    rid = lax.broadcasted_iota(jnp.int32, (block_nb, _LANES), 1)
    row_ids = base_row + gid * _LANES + rid
    losses = jnp.where(row_ids < batch, losses, 0.0)

    # Accumulate into this core's resident (1,1,1) partial-sum block.
    out_ref[...] += jnp.sum(losses).reshape(1, 1, 1)


def contrastive_loss(output1, output2, target, size_average=True,
                     margin=1.0, eps=1e-9, block_groups=None):
    """output1, output2: (B, D) float32 or bfloat16; target: (B,) {0, 1}."""
    B, D = output1.shape
    assert output2.shape == (B, D)
    itemsize = jnp.dtype(output1.dtype).itemsize

    # ---- tile sizing (in 128-row groups), with corrected VMEM accounting ----
    grp_in = _LANES * D * itemsize          # streamed bytes per group, per input
    grp_f32 = _LANES * D * 4                # f32 upcast / diff temporaries
    grp_row = _LANES * 4                    # lane-dense per-row f32 quantities
    # Per-group VMEM cost: 2 inputs x 2 pipeline buffers + ~2 full f32 temps
    # + target (double-buffered) + a handful of per-row temporaries.
    bytes_per_group = 4 * grp_in + 2 * grp_f32 + 10 * grp_row
    vmem_budget = 40 << 20                  # safe on v5e/v6e (128 MiB) & v7x (64 MiB)
    target_tile_bytes = 8 << 20             # ~8 MiB streamed per input per step
    nb = min(max(1, vmem_budget // bytes_per_group),
             max(1, target_tile_bytes // grp_in))
    if block_groups is not None:
        nb = int(block_groups)
    # The (groups, 128) target tile needs a sublane dim that is a multiple of 8
    # (or the full array, handled by the single-tile branch below).
    nb = max(_SUBLANES, (nb // _SUBLANES) * _SUBLANES)
    # TODO(synk): for very large D (where even an 8-group tile exceeds the VMEM
    # budget) the feature axis would also need tiling; not needed for typical
    # embedding sizes.

    # ---- grid: (partial-sum index, reduction steps) --------------------------
    ng_raw = _cdiv(B, _LANES)
    if ng_raw <= nb:
        block_nb = ng_raw                   # one tile holds the whole batch
        num_cores, steps_per_core = 1, 1
    else:
        block_nb = nb
        num_cores = 2                       # dual-TensorCore partial sums (v7x)
        steps_per_core = _cdiv(_cdiv(ng_raw, block_nb), num_cores)
    ng = num_cores * steps_per_core * block_nb
    b_pad = ng * _LANES

    # ---- lane-dense (groups, 128, D) / (groups, 128) views -------------------
    tgt_f32 = target.astype(jnp.float32).reshape(B)
    if b_pad != B:
        pad = b_pad - B
        o1p = jnp.pad(output1, ((0, pad), (0, 0)))
        o2p = jnp.pad(output2, ((0, pad), (0, 0)))
        tgtp = jnp.pad(tgt_f32, ((0, pad),))
    else:
        o1p, o2p, tgtp = output1, output2, tgt_f32
    o1g = o1p.reshape(ng, _LANES, D)
    o2g = o2p.reshape(ng, _LANES, D)
    tgtg = tgtp.reshape(ng, _LANES)

    # ---- VMEM limit from the (corrected) per-tile footprint -------------------
    vmem_bytes = (4 * block_nb * grp_in + 2 * block_nb * grp_f32
                  + 10 * block_nb * grp_row + (2 << 20))
    vmem_limit = int(min(max(vmem_bytes, 24 << 20), 56 << 20))

    kernel = functools.partial(
        _contrastive_loss_kernel,
        block_nb=block_nb, steps_per_core=steps_per_core,
        batch=B, margin=float(margin), eps=float(eps))

    cost = pl.CostEstimate(
        flops=int(4 * b_pad * D + 8 * b_pad),
        transcendentals=int(b_pad),
        bytes_accessed=int(2 * b_pad * D * itemsize + b_pad * 4 + num_cores * 4))

    partials = pl.pallas_call(
        kernel,
        out_shape=jax.ShapeDtypeStruct((num_cores, 1, 1), jnp.float32),
        grid_spec=pltpu.PrefetchScalarGridSpec(
            num_scalar_prefetch=0,
            grid=(num_cores, steps_per_core),
            in_specs=[
                pl.BlockSpec((block_nb, _LANES, D),
                             lambda c, s: (c * steps_per_core + s, 0, 0)),
                pl.BlockSpec((block_nb, _LANES, D),
                             lambda c, s: (c * steps_per_core + s, 0, 0)),
                pl.BlockSpec((block_nb, _LANES),
                             lambda c, s: (c * steps_per_core + s, 0)),
            ],
            out_specs=pl.BlockSpec((1, 1, 1), lambda c, s: (c, 0, 0)),
        ),
        compiler_params=pltpu.CompilerParams(
            dimension_semantics=("parallel", "arbitrary"),
            vmem_limit_bytes=vmem_limit,
        ),
        cost_estimate=cost,
    )(o1g, o2g, tgtg)

    loss_sum = jnp.sum(partials)
    if size_average:
        return loss_sum / jnp.float32(B)
    return loss_sum


def _reference(output1, output2, target, size_average=True, margin=1.0, eps=1e-9):
    o1 = output1.astype(jnp.float32)
    o2 = output2.astype(jnp.float32)
    distances = jnp.sum((o2 - o1) ** 2, axis=1)
    hinge = jnp.maximum(margin - jnp.sqrt(distances + eps), 0.0)
    t = target.astype(jnp.float32)
    losses = 0.5 * (t * distances + (1.0 - t) * hinge ** 2)
    return jnp.mean(losses) if size_average else jnp.sum(losses)


if __name__ == "__main__":
    key = jax.random.PRNGKey(0)

    # --- Test 1: small f32, mean (single tile) ---
    k1, k2, k3 = jax.random.split(key, 3)
    B, D = 16, 32
    o1 = jax.random.normal(k1, (B, D), dtype=jnp.float32)
    o2 = jax.random.normal(k2, (B, D), dtype=jnp.float32)
    tgt = jax.random.bernoulli(k3, 0.5, (B,)).astype(jnp.int32)
    out = jax.block_until_ready(contrastive_loss(o1, o2, tgt, size_average=True))
    ref = _reference(o1, o2, tgt, size_average=True)
    assert jnp.allclose(out, ref, atol=1e-5, rtol=1e-5), (out, ref)

    # --- Test 2: B not a multiple of 8/128, sum (exercises tail-row masking) ---
    k4, k5, k6 = jax.random.split(k3, 3)
    B2, D2 = 13, 32
    o1b = jax.random.normal(k4, (B2, D2), dtype=jnp.float32)
    o2b = jax.random.normal(k5, (B2, D2), dtype=jnp.float32)
    tgtb = jax.random.bernoulli(k6, 0.5, (B2,)).astype(jnp.int32)
    out2 = jax.block_until_ready(contrastive_loss(o1b, o2b, tgtb, size_average=False))
    ref2 = _reference(o1b, o2b, tgtb, size_average=False)
    assert jnp.allclose(out2, ref2, atol=1e-4, rtol=1e-5), (out2, ref2)

    # --- Test 3: bf16 ingest, multi-step grid + two partial-sum blocks ---
    k7, k8, k9 = jax.random.split(k6, 3)
    B3, D3 = 2100, 64
    o1c = jax.random.normal(k7, (B3, D3), dtype=jnp.float32).astype(jnp.bfloat16)
    o2c = jax.random.normal(k8, (B3, D3), dtype=jnp.float32).astype(jnp.bfloat16)
    tgtc = jax.random.bernoulli(k9, 0.5, (B3,)).astype(jnp.int32)
    out3 = jax.block_until_ready(
        contrastive_loss(o1c, o2c, tgtc, size_average=True, block_groups=8))
    ref3 = _reference(o1c, o2c, tgtc, size_average=True)
    assert jnp.allclose(out3, ref3, atol=1e-3, rtol=1e-3), (out3, ref3)

    print("KERNEL_OK")
</pallas_src>

<mosaic_0001>
module attributes {stable_mosaic.version = 11 : i64} {
  func.func @_contrastive_loss_kernel(%arg0: i32, %arg1: i32, %arg2: memref<1x128x32xf32, #tpu.memory_space<vmem>>, %arg3: memref<1x128x32xf32, #tpu.memory_space<vmem>>, %arg4: memref<1x128xf32, #tpu.memory_space<vmem>>, %arg5: memref<1x1x1xf32, #tpu.memory_space<vmem>>) attributes {dimension_semantics = [#tpu.dimension_semantics<parallel>, #tpu.dimension_semantics<arbitrary>], iteration_bounds = array<i64: 1, 1>, scalar_prefetch = 0 : i64, scratch_operands = 0 : i64, tpu.core_type = #tpu.core_type<tc>, window_params = [{transform_indices = @transform_0, window_bounds = array<i64: 1, 128, 32>}, {transform_indices = @transform_1, window_bounds = array<i64: 1, 128, 32>}, {transform_indices = @transform_2, window_bounds = array<i64: 1, 128>}, {transform_indices = @transform_3, window_bounds = array<i64: 1, 1, 1>}]} {
    %c0_i32 = arith.constant 0 : i32
    %0 = arith.cmpi eq, %arg1, %c0_i32 : i32
    %1 = arith.extui %0 : i1 to i32
    %c0_i32_0 = arith.constant 0 : i32
    %2 = arith.cmpi ne, %1, %c0_i32_0 : i32
    scf.if %2 {
      %cst_23 = arith.constant 0.000000e+00 : f32
      %47 = vector.broadcast %cst_23 : f32 to vector<1x1x1xf32>
      %c0_24 = arith.constant 0 : index
      %c0_25 = arith.constant 0 : index
      %c0_26 = arith.constant 0 : index
      %48 = vector.load %arg5[%c0_24, %c0_25, %c0_26] : memref<1x1x1xf32, #tpu.memory_space<vmem>>, vector<1x1x1xf32>
      tpu.vector_store %arg5[%c0_24, %c0_25, %c0_26], %47 {strides = array<i32>} : memref<1x1x1xf32, #tpu.memory_space<vmem>>, vector<1x1x1xf32>,
    } else {
    }
    %c0 = arith.constant 0 : index
    %c0_1 = arith.constant 0 : index
    %c0_2 = arith.constant 0 : index
    %3 = vector.load %arg2[%c0, %c0_1, %c0_2] : memref<1x128x32xf32, #tpu.memory_space<vmem>>, vector<1x128x32xf32>
    %c0_3 = arith.constant 0 : index
    %c0_4 = arith.constant 0 : index
    %c0_5 = arith.constant 0 : index
    %4 = vector.load %arg3[%c0_3, %c0_4, %c0_5] : memref<1x128x32xf32, #tpu.memory_space<vmem>>, vector<1x128x32xf32>
    %5 = arith.subf %4, %3 : vector<1x128x32xf32>
    %6 = arith.mulf %5, %5 : vector<1x128x32xf32>
    %cst = arith.constant dense<0.000000e+00> : vector<1x128xf32>
    %7 = vector.multi_reduction <add>, %6, %cst [2] : vector<1x128x32xf32> to vector<1x128xf32>
    %c0_6 = arith.constant 0 : index
    %c0_7 = arith.constant 0 : index
    %8 = vector.load %arg4[%c0_6, %c0_7] : memref<1x128xf32, #tpu.memory_space<vmem>>, vector<1x128xf32>
    %cst_8 = arith.constant 9.99999971E-10 : f32
    %9 = vector.broadcast %cst_8 : f32 to vector<1x128xf32>
    %10 = arith.addf %7, %9 : vector<1x128xf32>
    %11 = math.sqrt %10 : vector<1x128xf32>
    %cst_9 = arith.constant 1.000000e+00 : f32
    %12 = vector.broadcast %cst_9 : f32 to vector<1x128xf32>
    %13 = arith.subf %12, %11 : vector<1x128xf32>
    %cst_10 = arith.constant 0.000000e+00 : f32
    %14 = vector.broadcast %cst_10 : f32 to vector<1x128xf32>
    %15 = arith.maximumf %13, %14 : vector<1x128xf32>
    %16 = arith.mulf %8, %7 : vector<1x128xf32>
    %cst_11 = arith.constant 1.000000e+00 : f32
    %17 = vector.broadcast %cst_11 : f32 to vector<1x128xf32>
    %18 = arith.subf %17, %8 : vector<1x128xf32>
    %19 = arith.mulf %18, %15 : vector<1x128xf32>
    %20 = arith.mulf %19, %15 : vector<1x128xf32>
    %21 = arith.addf %16, %20 : vector<1x128xf32>
    %cst_12 = arith.constant 5.000000e-01 : f32
    %22 = vector.broadcast %cst_12 : f32 to vector<1x128xf32>
    %23 = arith.mulf %22, %21 : vector<1x128xf32>
    %c1_i32 = arith.constant 1 : i32
    %24 = arith.muli %arg0, %c1_i32 : i32
    %25 = arith.addi %24, %arg1 : i32
    %c1_i32_13 = arith.constant 1 : i32
    %26 = arith.muli %25, %c1_i32_13 : i32
    %c128_i32 = arith.constant 128 : i32
    %27 = arith.muli %26, %c128_i32 : i32
    %28 = tpu.iota {dimensions = array<i32: 0>} : vector<1x128xi32>
    %29 = tpu.iota {dimensions = array<i32: 1>} : vector<1x128xi32>
    %c128_i32_14 = arith.constant 128 : i32
    %30 = vector.broadcast %c128_i32_14 : i32 to vector<1x128xi32>
    %31 = arith.muli %28, %30 : vector<1x128xi32>
    %32 = vector.broadcast %27 : i32 to vector<1x128xi32>
    %33 = arith.addi %32, %31 : vector<1x128xi32>
    %34 = arith.addi %33, %29 : vector<1x128xi32>
    %c16_i32 = arith.constant 16 : i32
    %35 = vector.broadcast %c16_i32 : i32 to vector<1x128xi32>
    %36 = arith.cmpi slt, %34, %35 : vector<1x128xi32>
    %cst_15 = arith.constant 0.000000e+00 : f32
    %37 = vector.broadcast %cst_15 : f32 to vector<1x128xf32>
    %38 = arith.select %36, %23, %37 : vector<1x128xi1>, vector<1x128xf32>
    %c0_16 = arith.constant 0 : index
    %c0_17 = arith.constant 0 : index
    %c0_18 = arith.constant 0 : index
    %39 = vector.load %arg5[%c0_16, %c0_17, %c0_18] : memref<1x1x1xf32, #tpu.memory_space<vmem>>, vector<1x1x1xf32>
    %40 = vector.shape_cast %38 : vector<1x128xf32> to vector<1x1x128xf32>
    %cst_19 = arith.constant dense<0.000000e+00> : vector<1xf32>
    %41 = vector.multi_reduction <add>, %40, %cst_19 [1, 2] : vector<1x1x128xf32> to vector<1xf32>
    %42 = vector.shape_cast %41 : vector<1xf32> to vector<1x1x1xf32>
    %43 = vector.extract %42[0, 0, 0] : f32 from vector<1x1x1xf32>
    %44 = vector.broadcast %43 : f32 to vector<1x1x1xf32>
    %45 = arith.addf %39, %44 : vector<1x1x1xf32>
    %c0_20 = arith.constant 0 : index
    %c0_21 = arith.constant 0 : index
    %c0_22 = arith.constant 0 : index
    %46 = vector.load %arg5[%c0_20, %c0_21, %c0_22] : memref<1x1x1xf32, #tpu.memory_space<vmem>>, vector<1x1x1xf32>
    tpu.vector_store %arg5[%c0_20, %c0_21, %c0_22], %45 {strides = array<i32>} : memref<1x1x1xf32, #tpu.memory_space<vmem>>, vector<1x1x1xf32>,
    return
  }
  func.func @transform_0(%arg0: i32, %arg1: i32) -> (i32, i32, i32) {
    %c1_i32 = arith.constant 1 : i32
    %0 = arith.muli %arg0, %c1_i32 : i32
    %1 = arith.addi %0, %arg1 : i32
    %c0_i32 = arith.constant 0 : i32
    %c0_i32_0 = arith.constant 0 : i32
    %c0_i32_1 = arith.constant 0 : i32
    return %1, %c0_i32, %c0_i32_0 : i32, i32, i32
  }
  func.func @transform_1(%arg0: i32, %arg1: i32) -> (i32, i32, i32) {
    %c1_i32 = arith.constant 1 : i32
    %0 = arith.muli %arg0, %c1_i32 : i32
    %1 = arith.addi %0, %arg1 : i32
    %c0_i32 = arith.constant 0 : i32
    %c0_i32_0 = arith.constant 0 : i32
    %c0_i32_1 = arith.constant 0 : i32
    return %1, %c0_i32, %c0_i32_0 : i32, i32, i32
  }
  func.func @transform_2(%arg0: i32, %arg1: i32) -> (i32, i32) {
    %c1_i32 = arith.constant 1 : i32
    %0 = arith.muli %arg0, %c1_i32 : i32
    %1 = arith.addi %0, %arg1 : i32
    %c0_i32 = arith.constant 0 : i32
    %c0_i32_0 = arith.constant 0 : i32
    return %1, %c0_i32 : i32, i32
  }
  func.func @transform_3(%arg0: i32, %arg1: i32) -> (i32, i32, i32) {
    %c0_i32 = arith.constant 0 : i32
    %c0_i32_0 = arith.constant 0 : i32
    %c0_i32_1 = arith.constant 0 : i32
    return %arg0, %c0_i32, %c0_i32_0 : i32, i32, i32
  }
}

</mosaic_0001>

<bundles_post_ra>
// kernel: tpu_custom_call.1
= control target key start
LH: loop header
LB: loop body
LE: loop exit
PB: predicated region body
PF: predicated region fallthrough
CT: control target
= control target key end

     0   :  { %vm139_vm0 = vcmask 261120   ;;  %s4931_s0 = inlined_call_operand.vmem [shape: f32[1,128,32], index: 0, kind: input, shape index: {}]   ;;  %s4932_s1 = inlined_call_operand.vmem [shape: f32[1,128,32], index: 1, kind: input, shape index: {}]   ;;  %s4933_s2 = inlined_call_operand.vmem [shape: f32[1,128], index: 2, kind: input, shape index: {}]   ;;  %s4934_s3 = inlined_call_operand.hbm [shape: f32[1,1,1], index: 3, kind: output, shape index: {}]  }
   0x1   :  { %v77_v0 = vld [vmem:[%s4931_s0 + $0x10] sm:$0xff]  ;;  %v75_v2 = vld [vmem:[%s4931_s0] sm:$0xff]  ;;  %v78_v5 = vld [vmem:[%s4931_s0 + $0x18] sm:$0xff] }
   0x2   :  { %v93_v1 = vld [vmem:[%s4932_s1 + $0x10] sm:$0xff]  ;;  %v91_v4 = vld [vmem:[%s4932_s1] sm:$0xff]  ;;  %v94_v6 = vld [vmem:[%s4932_s1 + $0x18] sm:$0xff] }
   0x3   :  { %v109_v3 = vsub.f32 %v93_v1, %v77_v0  ;;  %v107_v7 = vsub.f32 %v91_v4, %v75_v2  ;;  %v110_v8 = vsub.f32 %v94_v6, %v78_v5  ;;  %v76_v9 = vld [vmem:[%s4931_s0 + $0x8] sm:$0xff]  ;;  %v79_v15 = vld [vmem:[%s4931_s0 + $0x20] sm:$0xff]  ;;  %v82_v21 = vld [vmem:[%s4931_s0 + $0x38] sm:$0xff] }
   0x4   :  { %v92_v10 = vld [vmem:[%s4932_s1 + $0x8] sm:$0xff]  ;;  %v95_v16 = vld [vmem:[%s4932_s1 + $0x20] sm:$0xff]  ;;  %v98_v22 = vld [vmem:[%s4932_s1 + $0x38] sm:$0xff] }
   0x5   :  { %v80_v11 = vld [vmem:[%s4931_s0 + $0x28] sm:$0xff]  ;;  %v125_v12 = vmul.f32 %v109_v3, %v109_v3  ;;  %v108_v13 = vsub.f32 %v92_v10, %v76_v9  ;;  %v123_v17 = vmul.f32 %v107_v7, %v107_v7  ;;  %v126_v18 = vmul.f32 %v110_v8, %v110_v8  ;;  %v81_v25 = vld [vmem:[%s4931_s0 + $0x30] sm:$0xff]  ;;  %v83_v36 = vld [vmem:[%s4931_s0 + $0x40] sm:$0xff] }
   0x6   :  { %v96_v14 = vld [vmem:[%s4932_s1 + $0x28] sm:$0xff]  ;;  %v111_v20 = vsub.f32 %v95_v16, %v79_v15  ;;  %v97_v26 = vld [vmem:[%s4932_s1 + $0x30] sm:$0xff]  ;;  %v114_v30 = vsub.f32 %v98_v22, %v82_v21  ;;  %v99_v37 = vld [vmem:[%s4932_s1 + $0x40] sm:$0xff] }
   0x7   :  { %v112_v19 = vsub.f32 %v96_v14, %v80_v11  ;;  %v146_v23 = vsel %vm139_vm0, %v125_v12, 0.0  ;;  %v124_v24 = vmul.f32 %v108_v13, %v108_v13  ;;  %v140_v27 = vsel %vm139_vm0, %v123_v17, 0.0  ;;  %v84_v34 = vld [vmem:[%s4931_s0 + $0x48] sm:$0xff] }
   0x8   :  { %147 = vadd.xlane.f32.xlu1 %v146_v23  ;;  %141 = vadd.xlane.f32.xlu0 %v140_v27  ;;  %v149_v28 = vsel %vm139_vm0, %v126_v18, 0.0  ;;  %v127_v32 = vmul.f32 %v111_v20, %v111_v20  ;;  %v113_v33 = vsub.f32 %v97_v26, %v81_v25  ;;  %v100_v35 = vld [vmem:[%s4932_s1 + $0x48] sm:$0xff] }
   0x9   :  { %v128_v29 = vmul.f32 %v112_v19, %v112_v19  ;;  %v143_v31 = vsel %vm139_vm0, %v124_v24, 0.0 }
   0xc   :  { %150 = vadd.xlane.f32.xlu1 %v149_v28 }
   0xd   :  { %8 = vsyncpa [#allocation3], 0  ;;  %144 = vadd.xlane.f32.xlu0 %v143_v31  ;;  %v155_v38 = vsel %vm139_vm0, %v128_v29, 0.0  ;;  %v130_v39 = vmul.f32 %v114_v30, %v114_v30  ;;  %v116_v40 = vsub.f32 %v100_v35, %v84_v34  ;;  %v152_v41 = vsel %vm139_vm0, %v127_v32, 0.0  ;;  %v86_v44 = vld [vmem:[%s4931_s0 + $0x58] sm:$0xff]  ;;  %v85_v46 = vld [vmem:[%s4931_s0 + $0x50] sm:$0xff] }
   0xe   :  { %v129_v42 = vmul.f32 %v113_v33, %v113_v33  ;;  %v115_v43 = vsub.f32 %v99_v37, %v83_v36  ;;  %v102_v45 = vld [vmem:[%s4932_s1 + $0x58] sm:$0xff]  ;;  %v101_v47 = vld [vmem:[%s4932_s1 + $0x50] sm:$0xff]  ;;  %v88_v54 = vld [vmem:[%s4931_s0 + $0x68] sm:$0xff]  ;;  %v3556_v16 = vmov 0   ;;  %v365_v17 = vlaneseq }
   0xf   :  { %v161_v48 = vsel %vm139_vm0, %v130_v39, 0.0  ;;  %v132_v49 = vmul.f32 %v116_v40, %v116_v40  ;;  %v118_v50 = vsub.f32 %v102_v45, %v86_v44  ;;  %v117_v53 = vsub.f32 %v101_v47, %v85_v46  ;;  %v104_v55 = vld [vmem:[%s4932_s1 + $0x68] sm:$0xff]  ;;  %v87_v56 = vld [vmem:[%s4931_s0 + $0x60] sm:$0xff]  ;;  %v90_v0 = vld [vmem:[%s4931_s0 + $0x78] sm:$0xff]  ;;  %3498 = vset.pattern.permute.xlu1 %v3556_v16  ;;  %3499 = vset.pattern.permute.xlu0 %v3556_v16 }
  0x10   :  { %156 = vadd.xlane.f32.xlu1 %v155_v38  ;;  %v158_v51 = vsel %vm139_vm0, %v129_v42, 0.0  ;;  %v131_v52 = vmul.f32 %v115_v43, %v115_v43  ;;  %v103_v57 = vld [vmem:[%s4932_s1 + $0x60] sm:$0xff]  ;;  %v120_v60 = vsub.f32 %v104_v55, %v88_v54  ;;  %v106_v1 = vld [vmem:[%s4932_s1 + $0x78] sm:$0xff]  ;;  %v89_v2 = vld [vmem:[%s4931_s0 + $0x70] sm:$0xff]  ;;  %v3557_v18 = vmov 1966171168  }
  0x11   :  { %153 = vadd.xlane.f32.xlu0 %v152_v41  ;;  %v167_v58 = vsel %vm139_vm0, %v132_v49, 0.0  ;;  %v134_v59 = vmul.f32 %v118_v50, %v118_v50  ;;  %v133_v62 = vmul.f32 %v117_v53, %v117_v53  ;;  %v119_v63 = vsub.f32 %v103_v57, %v87_v56  ;;  %v105_v3 = vld [vmem:[%s4932_s1 + $0x70] sm:$0xff] }
  0x12   :  { %v164_v61 = vsel %vm139_vm0, %v131_v52, 0.0  ;;  %v136_v5 = vmul.f32 %v120_v60, %v120_v60  ;;  %v122_v6 = vsub.f32 %v106_v1, %v90_v0  ;;  %v121_v9 = vsub.f32 %v105_v3, %v89_v2 }
  0x13   :  { %v173_v4 = vsel %vm139_vm0, %v134_v59, 0.0  ;;  %v170_v7 = vsel %vm139_vm0, %v133_v62, 0.0  ;;  %v135_v8 = vmul.f32 %v119_v63, %v119_v63  ;;  %v882_v19 = vunpack.c.l.s4 %v3557_v18 }
  0x14   :  { %162 = vadd.xlane.f32.xlu1 %v161_v48  ;;  %v179_v10 = vsel %vm139_vm0, %v136_v5, 0.0  ;;  %v138_v11 = vmul.f32 %v122_v6, %v122_v6  ;;  %v137_v13 = vmul.f32 %v121_v9, %v121_v9  ;;  %v3693_v20 = vshrl.u32 %v365_v17, 7 }
  0x15   :  { %159 = vadd.xlane.f32.xlu0 %v158_v51  ;;  %v176_v12 = vsel %vm139_vm0, %v135_v8, 0.0  ;;  %v883_v22 = vunpack.c.0.s8 %v882_v19 }
  0x16   :  { %v185_v14 = vsel %vm139_vm0, %v138_v11, 0.0  ;;  %v182_v15 = vsel %vm139_vm0, %v137_v13, 0.0  ;;  %v3701_v25 = vsub.s32 0, %v3693_v20  ;;  %v3704_v26 = vsub.s32 1, %v3693_v20 }
  0x17   :  { %v3709_v28 = vsub.s32 2, %v3693_v20  ;;  %v3712_v29 = vsub.s32 3, %v3693_v20  ;;  %v3715_v30 = vsub.s32 4, %v3693_v20  ;;  %v3719_v31 = vsub.s32 5, %v3693_v20 }
  0x18   :  { %168 = vadd.xlane.f32.xlu1 %v167_v58  ;;  %v3722_v32 = vsub.s32 6, %v3693_v20  ;;  %v3725_v33 = vsub.s32 7, %v3693_v20  ;;  %v3731_v35 = vsub.s32 %v883_v22, %v3693_v20 }
  0x19   :  { %165 = vadd.xlane.f32.xlu0 %v164_v61 }
  0x1c   :  { %174 = vadd.xlane.f32.xlu1 %v173_v4 }
  0x1d   :  { %171 = vadd.xlane.f32.xlu0 %v170_v7 }
  0x20   :  { %180 = vadd.xlane.f32.xlu1 %v179_v10 }
  0x21   :  { %177 = vadd.xlane.f32.xlu0 %v176_v12 }
  0x24   :  { %186 = vadd.xlane.f32.xlu1 %v185_v14 }
  0x25   :  { %183 = vadd.xlane.f32.xlu0 %v182_v15 }
  0x95   :  { %v3695_v21 = vpop.xlane.xlu1 %147  ;;  %v142_v24 = vpop.xlane.xlu0 %141 }
  0x96   :  { %v3698_v23 = vadd.f32 1e-09, %v3695_v21  ;;  %v3706_v27 = vadd.f32 1e-09, %v142_v24  ;;  %v432_v36 = vrot.slane %v3695_v21, %v3701_v25  ;;  %v368_v39 = vrot.slane %v142_v24, %v3701_v25 }
  0x97   :  { %v372_v40 = vrot.slane %v142_v24, %v3704_v26  ;;  %v436_v41 = vrot.slane %v3695_v21, %v3704_v26  ;;  %v376_v43 = vrot.slane %v142_v24, %v3709_v28  ;;  %v380_v44 = vrot.slane %v142_v24, %v3712_v29 }
  0x98   :  { %3500 = vrsqrt.f32 %v3698_v23  ;;  %v384_v45 = vrot.slane %v142_v24, %v3715_v30  ;;  %v388_v46 = vrot.slane %v142_v24, %v3719_v31  ;;  %v392_v47 = vrot.slane %v142_v24, %v3722_v32 }
  0x99   :  { %3502 = vrsqrt.f32 %v3706_v27  ;;  %v3728_v34 = vpop.xlane.xlu1 %150  ;;  %v396_v48 = vrot.slane %v142_v24, %v3725_v33  ;;  %vm221_vm1 = vcmp.eq.f32.partialorder %v3698_v23, inf  ;;  %vm223_vm2 = vcmp.eq.f32.partialorder %v3698_v23, 0.0 }
  0x9a   :  { %v3736_v37 = vadd.f32 1e-09, %v3728_v34  ;;  %v3738_v38 = vpop.xlane.xlu0 %144  ;;  %v440_v50 = vrot.slane %v3695_v21, %v3709_v28  ;;  %v224_v51 = vand.u32 2147483648, %v3698_v23  ;;  %vm207_vm3 = vcmp.eq.f32.partialorder %v3706_v27, inf }
  0x9b   :  { %v3745_v42 = vadd.f32 1e-09, %v3738_v38  ;;  %v877_v54 = vcombine.low %v368_v39, %v372_v40  ;;  %vm209_vm4 = vcmp.eq.f32.partialorder %v3706_v27, 0.0  ;;  %v210_v55 = vand.u32 2147483648, %v3706_v27 }
  0x9c   :  { %3504 = vrsqrt.f32 %v3736_v37  ;;  %v878_v57 = vcombine.low %v376_v43, %v380_v44  ;;  %vm228_vm5 = vcmp.eq.f32.partialorder %v3736_v37, inf  ;;  %v879_v58 = vcombine.low %v384_v45, %v388_v46 }
  0x9d   :  { %3506 = vrsqrt.f32 %v3745_v42  ;;  %v3757_v49 = vpop.xlane.xlu1 %156  ;;  %v880_v59 = vcombine.low %v392_v47, %v396_v48  ;;  %vm230_vm6 = vcmp.eq.f32.partialorder %v3736_v37, 0.0  ;;  %v231_v60 = vand.u32 2147483648, %v3736_v37 }
  0x9e   :  { %v3764_v52 = vadd.f32 1e-09, %v3757_v49  ;;  %v3766_v53 = vpop.xlane.xlu0 %153  ;;  %vm214_vm7 = vcmp.eq.f32.partialorder %v3745_v42, inf  ;;  %vm216_vm8 = vcmp.eq.f32.partialorder %v3745_v42, 0.0  ;;  %v217_v63 = vand.u32 2147483648, %v3745_v42 }
  0x9f   :  { %v3771_v56 = vadd.f32 1e-09, %v3766_v53  ;;  %v887_v2 = vrot.slane %v877_v54, %v3731_v35  ;;  %v464_v3 = vrot.slane %v3728_v34, %v3701_v25  ;;  %v894_v7 = vrot.slane %v878_v57, %v3731_v35 }
  0xa0   :  { %3508 = vrsqrt.f32 %v3764_v52  ;;  %v468_v8 = vrot.slane %v3728_v34, %v3704_v26  ;;  %v901_v10 = vrot.slane %v879_v58, %v3731_v35  ;;  %v908_v11 = vrot.slane %v880_v59, %v3731_v35 }
  0xa1   :  { %3510 = vrsqrt.f32 %v3771_v56  ;;  %v3779_v61 = vpop.xlane.xlu1 %162  ;;  %vm242_vm9 = vcmp.eq.f32.partialorder %v3764_v52, inf  ;;  %vm244_vm10 = vcmp.eq.f32.partialorder %v3764_v52, 0.0  ;;  %v245_v16 = vand.u32 2147483648, %v3764_v52 }
  0xa2   :  { %v3501_v62 = vpop.eup %3500  ;;  %v3784_v0 = vadd.f32 1e-09, %v3779_v61  ;;  %v3786_v1 = vpop.xlane.xlu0 %159  ;;  %vm235_vm11 = vcmp.eq.f32.partialorder %v3771_v56, inf  ;;  %vm237_vm12 = vcmp.eq.f32.partialorder %v3771_v56, 0.0  ;;  %v238_v22 = vand.u32 2147483648, %v3771_v56 }
  0xa3   :  { %v3503_v4 = vpop.eup %3502  ;;  %v220_v5 = vmul.f32 %v3501_v62, %v3698_v23  ;;  %v3793_v6 = vadd.f32 1e-09, %v3786_v1  ;;  %v909_v24 = vcombine.low %v887_v2, %v894_v7  ;;  %v472_v40 = vrot.slane %v3728_v34, %v3709_v28 }
  0xa4   :  { %v206_v9 = vmul.f32 %v3503_v4, %v3706_v27  ;;  %3512 = vrsqrt.f32 %v3784_v0  ;;  %v910_v45 = vcombine.low %v901_v10, %v908_v11  ;;  %v476_v54 = vrot.slane %v3728_v34, %v3712_v29 }
  0xa5   :  { %v222_v12 = vsel %vm221_vm1, %v3698_v23, %v220_v5  ;;  %3514 = vrsqrt.f32 %v3793_v6  ;;  %v3818_v39 = vpop.xlane.xlu1 %168  ;;  %vm256_vm13 = vcmp.eq.f32.partialorder %v3784_v0, inf  ;;  %vm258_vm14 = vcmp.eq.f32.partialorder %v3784_v0, 0.0 }
  0xa6   :  { %v3505_v13 = vpop.eup %3504  ;;  %v225_v14 = vsel %vm223_vm2, %v224_v51, %v222_v12  ;;  %v208_v15 = vsel %vm207_vm3, %v3706_v27, %v206_v9  ;;  %v3820_v23 = vpop.xlane.xlu0 %165  ;;  %v3828_v46 = vadd.f32 1e-09, %v3818_v39  ;;  %v917_v51 = vrot.slane %v909_v24, %v3731_v35 }
  0xa7   :  { %v3507_v18 = vpop.eup %3506  ;;  %v227_v19 = vmul.f32 %v3505_v13, %v3736_v37  ;;  %v211_v43 = vsel %vm209_vm4, %v210_v55, %v208_v15  ;;  %v319_v47 = vsub.f32 1.0, %v225_v14  ;;  %v924_v58 = vrot.slane %v910_v45, %v3731_v35 }
  0xa8   :  { %v213_v44 = vmul.f32 %v3507_v18, %v3745_v42  ;;  %v3843_v59 = vadd.f32 1e-09, %v3820_v23  ;;  %v317_v2 = vsub.f32 1.0, %v211_v43  ;;  %3516 = vrsqrt.f32 %v3828_v46 }
  0xa9   :  { %v229_v48 = vsel %vm228_vm5, %v3736_v37, %v227_v19  ;;  %v925_v7 = vcombine.low %v917_v51, %v924_v58  ;;  %v259_v10 = vand.u32 2147483648, %v3784_v0  ;;  %vm249_vm15 = vcmp.eq.f32.partialorder %v3793_v6, inf }
  0xaa   :  { %v3509_v57 = vpop.eup %3508  ;;  %v232_v27 = vsel %vm230_vm6, %v231_v60, %v229_v48  ;;  %v215_v55 = vsel %vm214_vm7, %v3745_v42, %v213_v44  ;;  %3518 = vrsqrt.f32 %v3843_v59  ;;  %v3863_v14 = vmax.f32 %v319_v47, 0.0 }
  0xab   :  { %v3511_v62 = vpop.eup %3510  ;;  %v218_v4 = vsel %vm216_vm8, %v217_v63, %v215_v55  ;;  %v241_v5 = vmul.f32 %v3509_v57, %v3764_v52  ;;  %v320_v37 = vsub.f32 1.0, %v232_v27  ;;  %1662 = vperm.xlu1 %3498, %v925_v7   ;;  %v3865_v15 = vmax.f32 %v317_v2, 0.0 }
  0xac   :  { %v234_v60 = vmul.f32 %v3511_v62, %v3771_v56  ;;  %v318_v63 = vsub.f32 1.0, %v218_v4  ;;  %v252_v19 = vand.u32 2147483648, %v3793_v6  ;;  %vm251_vm0 = vcmp.eq.f32.partialorder %v3793_v6, 0.0 }
  0xad   :  { %v243_v9 = vsel %vm242_vm9, %v3764_v52, %v241_v5  ;;  %v3869_v24 = vmax.f32 %v320_v37, 0.0  ;;  %vm270_vm1 = vcmp.eq.f32.partialorder %v3828_v46, inf  ;;  %v480_v45 = vrot.slane %v3728_v34, %v3715_v30 }
  0xae   :  { %v3513_v42 = vpop.eup %3512  ;;  %v246_v11 = vsel %vm244_vm10, %v245_v16, %v243_v9  ;;  %v236_v12 = vsel %vm235_vm11, %v3771_v56, %v234_v60  ;;  %v484_v47 = vrot.slane %v3728_v34, %v3719_v31  ;;  %v3883_v48 = vmax.f32 %v318_v63, 0.0 }
  0xaf   :  { %v3515_v13 = vpop.eup %3514  ;;  %v255_v18 = vmul.f32 %v3513_v42, %v3784_v0  ;;  %v322_v52 = vsub.f32 1.0, %v246_v11  ;;  %v239_v16 = vsel %vm237_vm12, %v238_v22, %v236_v12  ;;  %vm272_vm2 = vcmp.eq.f32.partialorder %v3828_v46, 0.0 }
  0xb0   :  { %v248_v44 = vmul.f32 %v3515_v13, %v3793_v6  ;;  %v273_v56 = vand.u32 2147483648, %v3828_v46  ;;  %v488_v22 = vrot.slane %v3728_v34, %v3722_v32  ;;  %v321_v51 = vsub.f32 1.0, %v239_v16 }
  0xb1   :  { %v257_v43 = vsel %vm256_vm13, %v3784_v0, %v255_v18  ;;  %vm263_vm3 = vcmp.eq.f32.partialorder %v3843_v59, inf  ;;  %v266_v57 = vand.u32 2147483648, %v3843_v59  ;;  %v492_v27 = vrot.slane %v3728_v34, %v3725_v33 }
  0xb2   :  { %v1024_v55 = vcombine.low %v464_v3, %v468_v8  ;;  %v3899_v58 = vmax.f32 %v322_v52, 0.0  ;;  %v260_v62 = vsel %vm258_vm14, %v259_v10, %v257_v43  ;;  %v1025_v2 = vcombine.low %v472_v40, %v476_v54  ;;  %v3517_v5 = vpop.eup %3516 }
  0xb3   :  { %v1026_v4 = vcombine.low %v480_v45, %v484_v47  ;;  %v250_v37 = vsel %vm249_vm15, %v3793_v6, %v248_v44  ;;  %v1027_v60 = vcombine.low %v488_v22, %v492_v27  ;;  %v400_v9 = vrot.slane %v3738_v38, %v3701_v25  ;;  %v3938_v6 = vpop.xlane.xlu0 %171 }
  0xb4   :  { %v1034_v7 = vrot.slane %v1024_v55, %v3731_v35  ;;  %v269_v34 = vmul.f32 %v3517_v5, %v3828_v46  ;;  %vm265_vm4 = vcmp.eq.f32.partialorder %v3843_v59, 0.0  ;;  %v1041_v0 = vrot.slane %v1025_v2, %v3731_v35  ;;  %v3519_v63 = vpop.eup %3518 }
  0xb5   :  { %v1048_v3 = vrot.slane %v1026_v4, %v3731_v35  ;;  %v404_v8 = vrot.slane %v3738_v38, %v3704_v26  ;;  %v1055_v40 = vrot.slane %v1027_v60, %v3731_v35  ;;  %v408_v54 = vrot.slane %v3738_v38, %v3709_v28 }
  0xb6   :  { %v412_v10 = vrot.slane %v3738_v38, %v3712_v29  ;;  %v416_v42 = vrot.slane %v3738_v38, %v3715_v30  ;;  %v271_v11 = vsel %vm270_vm1, %v3828_v46, %v269_v34  ;;  %v1056_v12 = vcombine.low %v1034_v7, %v1041_v0 }
  0xb7   :  { %v420_v13 = vrot.slane %v3738_v38, %v3719_v31  ;;  %v424_v18 = vrot.slane %v3738_v38, %v3722_v32  ;;  %v253_v52 = vsel %vm251_vm0, %v252_v19, %v250_v37  ;;  %v262_v16 = vmul.f32 %v3519_v63, %v3843_v59 }
  0xb8   :  { %v1057_v43 = vcombine.low %v1048_v3, %v1055_v40  ;;  %v428_v44 = vrot.slane %v3738_v38, %v3725_v33  ;;  %v274_v45 = vsel %vm272_vm2, %v273_v56, %v271_v11  ;;  %v1064_v47 = vrot.slane %v1056_v12, %v3731_v35 }
  0xb9   :  { %v926_v22 = vcombine.low %v400_v9, %v404_v8  ;;  %v927_v27 = vcombine.low %v408_v54, %v412_v10  ;;  %v324_v55 = vsub.f32 1.0, %v260_v62  ;;  %v928_v4 = vcombine.low %v416_v42, %v420_v13  ;;  %v3947_v9 = vpop.xlane.xlu1 %174 }
  0xba   :  { %v1071_v2 = vrot.slane %v1057_v43, %v3731_v35  ;;  %v929_v5 = vcombine.low %v424_v18, %v428_v44  ;;  %v323_v19 = vsub.f32 1.0, %v253_v52  ;;  %v264_v37 = vsel %vm263_vm3, %v3843_v59, %v262_v16 }
  0xbb   :  { %v936_v38 = vrot.slane %v926_v22, %v3731_v35  ;;  %v943_v46 = vrot.slane %v927_v27, %v3731_v35  ;;  %v326_v56 = vsub.f32 1.0, %v274_v45  ;;  %v950_v7 = vrot.slane %v928_v4, %v3731_v35 }
  0xbc   :  { %v1072_v60 = vcombine.low %v1064_v47, %v1071_v2  ;;  %v957_v62 = vrot.slane %v929_v5, %v3731_v35  ;;  %v3949_v34 = vmax.f32 %v321_v51, 0.0  ;;  %v3952_v3 = vadd.f32 1e-09, %v3947_v9 }
  0xbd   :  { %v958_v0 = vcombine.low %v936_v38, %v943_v46  ;;  %v3955_v8 = vadd.f32 1e-09, %v3938_v6  ;;  %v3957_v40 = vmax.f32 %v324_v55, 0.0  ;;  %v267_v54 = vsel %vm265_vm4, %v266_v57, %v264_v37 }
  0xbe   :  { %1671 = vperm.xlu0 %3499, %v1072_v60   ;;  %v959_v10 = vcombine.low %v950_v7, %v957_v62  ;;  %v528_v42 = vrot.slane %v3757_v49, %v3701_v25  ;;  %3520 = vrsqrt.f32 %v3952_v3  ;;  %v532_v63 = vrot.slane %v3757_v49, %v3704_v26 }
  0xbf   :  { %v966_v51 = vrot.slane %v958_v0, %v3731_v35  ;;  %v536_v11 = vrot.slane %v3757_v49, %v3709_v28  ;;  %v3969_v12 = vmax.f32 %v323_v19, 0.0  ;;  %v3971_v13 = vmax.f32 %v326_v56, 0.0  ;;  %v4004_v56 = vpop.xlane.xlu0 %177 }
  0xc0   :  { %v973_v59 = vrot.slane %v959_v10, %v3731_v35  ;;  %3522 = vrsqrt.f32 %v3955_v8  ;;  %v325_v57 = vsub.f32 1.0, %v267_v54  ;;  %vm284_vm5 = vcmp.eq.f32.partialorder %v3952_v3, inf  ;;  %v4011_v54 = vpop.xlane.xlu1 %180 }
  0xc1   :  { %v540_v18 = vrot.slane %v3757_v49, %v3712_v29  ;;  %v544_v52 = vrot.slane %v3757_v49, %v3715_v30  ;;  %v548_v43 = vrot.slane %v3757_v49, %v3719_v31  ;;  %v552_v44 = vrot.slane %v3757_v49, %v3722_v32 }
  0xc2   :  { %v974_v16 = vcombine.low %v966_v51, %v973_v59  ;;  %v556_v45 = vrot.slane %v3757_v49, %v3725_v33  ;;  %v1122_v47 = vcombine.low %v528_v42, %v532_v63  ;;  %v444_v27 = vrot.slane %v3695_v21, %v3712_v29 }
  0xc3   :  { %v1123_v22 = vcombine.low %v536_v11, %v540_v18  ;;  %v448_v55 = vrot.slane %v3695_v21, %v3715_v30  ;;  %v1124_v2 = vcombine.low %v544_v52, %v548_v43  ;;  %v452_v5 = vrot.slane %v3695_v21, %v3719_v31 }
  0xc4   :  { %1665 = vperm.xlu1 %3498, %v974_v16   ;;  %v1125_v4 = vcombine.low %v552_v44, %v556_v45  ;;  %v456_v19 = vrot.slane %v3695_v21, %v3722_v32  ;;  %v1132_v37 = vrot.slane %v1122_v47, %v3731_v35  ;;  %v460_v38 = vrot.slane %v3695_v21, %v3725_v33 }
  0xc5   :  { %v1139_v49 = vrot.slane %v1123_v22, %v3731_v35  ;;  %v975_v46 = vcombine.low %v432_v36, %v436_v41  ;;  %v1146_v60 = vrot.slane %v1124_v2, %v3731_v35  ;;  %v976_v62 = vcombine.low %v440_v50, %v444_v27 }
  0xc6   :  { %v1153_v7 = vrot.slane %v1125_v4, %v3731_v35  ;;  %v977_v0 = vcombine.low %v448_v55, %v452_v5  ;;  %v978_v42 = vcombine.low %v456_v19, %v460_v38  ;;  %v4015_v63 = vadd.f32 1e-09, %v4011_v54 }
  0xc7   :  { %v1154_v10 = vcombine.low %v1132_v37, %v1139_v49  ;;  %v985_v51 = vrot.slane %v975_v46, %v3731_v35  ;;  %v992_v41 = vrot.slane %v976_v62, %v3731_v35  ;;  %v4020_v59 = vadd.f32 1e-09, %v4004_v56 }
  0xc8   :  { %v1155_v36 = vcombine.low %v1146_v60, %v1153_v7  ;;  %v999_v11 = vrot.slane %v977_v0, %v3731_v35  ;;  %v3521_v21 = vpop.eup %3520  ;;  %v287_v50 = vand.u32 2147483648, %v3952_v3  ;;  %v1006_v52 = vrot.slane %v978_v42, %v3731_v35 }
  0xc9   :  { %v1162_v18 = vrot.slane %v1154_v10, %v3731_v35  ;;  %3524 = vrsqrt.f32 %v4015_v63  ;;  %v283_v43 = vmul.f32 %v3521_v21, %v3952_v3  ;;  %vm286_vm6 = vcmp.eq.f32.partialorder %v3952_v3, 0.0 }
  0xca   :  { %v3523_v16 = vpop.eup %3522  ;;  %v1169_v44 = vrot.slane %v1155_v36, %v3731_v35  ;;  %v1007_v45 = vcombine.low %v985_v51, %v992_v41  ;;  %v4029_v47 = vmax.f32 %v325_v57, 0.0  ;;  %v1008_v27 = vcombine.low %v999_v11, %v1006_v52 }
  0xcb   :  { %v276_v22 = vmul.f32 %v3523_v16, %v3955_v8  ;;  %3526 = vrsqrt.f32 %v4020_v59  ;;  %v285_v55 = vsel %vm284_vm5, %v3952_v3, %v283_v43  ;;  %vm277_vm7 = vcmp.eq.f32.partialorder %v3955_v8, inf }
  0xcc   :  { %v1170_v2 = vcombine.low %v1162_v18, %v1169_v44  ;;  %v1015_v4 = vrot.slane %v1007_v45, %v3731_v35  ;;  %v288_v5 = vsel %vm286_vm6, %v287_v50, %v285_v55  ;;  %vm279_vm8 = vcmp.eq.f32.partialorder %v3955_v8, 0.0 }
  0xcd   :  { %v280_v57 = vand.u32 2147483648, %v3955_v8  ;;  %v1022_v19 = vrot.slane %v1008_v27, %v3731_v35  ;;  %v278_v37 = vsel %vm277_vm7, %v3955_v8, %v276_v22  ;;  %vm298_vm9 = vcmp.eq.f32.partialorder %v4015_v63, inf }
  0xce   :  { %1677 = vperm.xlu0 %3499, %v1170_v2   ;;  %vm300_vm10 = vcmp.eq.f32.partialorder %v4015_v63, 0.0  ;;  %v592_v3 = vrot.slane %v3779_v61, %v3701_v25  ;;  %v301_v38 = vand.u32 2147483648, %v4015_v63  ;;  %v596_v46 = vrot.slane %v3779_v61, %v3704_v26 }
  0xcf   :  { %v1023_v49 = vcombine.low %v1015_v4, %v1022_v19  ;;  %v600_v60 = vrot.slane %v3779_v61, %v3709_v28  ;;  %v328_v7 = vsub.f32 1.0, %v288_v5  ;;  %v604_v62 = vrot.slane %v3779_v61, %v3712_v29 }
  0xd0   :  { %v608_v0 = vrot.slane %v3779_v61, %v3715_v30  ;;  %v612_v10 = vrot.slane %v3779_v61, %v3719_v31  ;;  %v281_v42 = vsel %vm279_vm8, %v280_v57, %v278_v37  ;;  %vm291_vm11 = vcmp.eq.f32.partialorder %v4020_v59, inf }
  0xd1   :  { %1668 = vperm.xlu1 %3498, %v1023_v49   ;;  %v616_v51 = vrot.slane %v3779_v61, %v3722_v32  ;;  %v620_v36 = vrot.slane %v3779_v61, %v3725_v33  ;;  %v1220_v41 = vcombine.low %v592_v3, %v596_v46  ;;  %v1221_v11 = vcombine.low %v600_v60, %v604_v62 }
  0xd2   :  { %v1222_v21 = vcombine.low %v608_v0, %v612_v10  ;;  %v496_v50 = vrot.slane %v3766_v53, %v3701_v25  ;;  %v500_v18 = vrot.slane %v3766_v53, %v3704_v26  ;;  %v504_v43 = vrot.slane %v3766_v53, %v3709_v28 }
  0xd3   :  { %v3525_v8 = vpop.eup %3524  ;;  %v1223_v52 = vcombine.low %v616_v51, %v620_v36  ;;  %v1230_v16 = vrot.slane %v1220_v41, %v3731_v35  ;;  %v508_v44 = vrot.slane %v3766_v53, %v3712_v29  ;;  %vm293_vm12 = vcmp.eq.f32.partialorder %v4020_v59, 0.0  ;;  %v4094_v41 = vpop.xlane.xlu0 %183 }
  0xd4   :  { %v297_v61 = vmul.f32 %v3525_v8, %v4015_v63  ;;  %v1237_v45 = vrot.slane %v1221_v11, %v3731_v35  ;;  %v1244_v22 = vrot.slane %v1222_v21, %v3731_v35  ;;  %v512_v27 = vrot.slane %v3766_v53, %v3715_v30 }
  0xd5   :  { %v3527_v55 = vpop.eup %3526  ;;  %v1251_v2 = vrot.slane %v1223_v52, %v3731_v35  ;;  %v516_v4 = vrot.slane %v3766_v53, %v3719_v31  ;;  %v520_v5 = vrot.slane %v3766_v53, %v3722_v32  ;;  %v524_v57 = vrot.slane %v3766_v53, %v3725_v33 }
  0xd6   :  { %v299_v19 = vsel %vm298_vm9, %v4015_v63, %v297_v61  ;;  %v290_v37 = vmul.f32 %v3527_v55, %v4020_v59  ;;  %v1252_v3 = vcombine.low %v1230_v16, %v1237_v45  ;;  %v1073_v49 = vcombine.low %v496_v50, %v500_v18 }
  0xd7   :  { %v302_v46 = vsel %vm300_vm10, %v301_v38, %v299_v19  ;;  %v1253_v60 = vcombine.low %v1244_v22, %v1251_v2  ;;  %v1074_v62 = vcombine.low %v504_v43, %v508_v44  ;;  %v1075_v0 = vcombine.low %v512_v27, %v516_v4 }
  0xd8   :  { %v327_v10 = vsub.f32 1.0, %v281_v42  ;;  %v294_v51 = vand.u32 2147483648, %v4020_v59  ;;  %v1260_v36 = vrot.slane %v1252_v3, %v3731_v35  ;;  %v1076_v53 = vcombine.low %v520_v5, %v524_v57 }
  0xd9   :  { %v330_v11 = vsub.f32 1.0, %v302_v46  ;;  %v1267_v21 = vrot.slane %v1253_v60, %v3731_v35  ;;  %v1083_v8 = vrot.slane %v1073_v49, %v3731_v35  ;;  %v1090_v50 = vrot.slane %v1074_v62, %v3731_v35 }
  0xda   :  { %v4099_v63 = vmax.f32 %v328_v7, 0.0  ;;  %v292_v38 = vsel %vm291_vm11, %v4020_v59, %v290_v37  ;;  %v1097_v42 = vrot.slane %v1075_v0, %v3731_v35  ;;  %v1104_v18 = vrot.slane %v1076_v53, %v3731_v35 }
  0xdb   :  { %v1268_v52 = vcombine.low %v1260_v36, %v1267_v21  ;;  %v1105_v16 = vcombine.low %v1083_v8, %v1090_v50  ;;  %v4107_v43 = vadd.f32 1e-09, %v4094_v41  ;;  %v656_v44 = vrot.slane %v3818_v39, %v3701_v25 }
  0xdc   :  { %v4111_v61 = vmax.f32 %v327_v10, 0.0  ;;  %v1106_v7 = vcombine.low %v1097_v42, %v1104_v18  ;;  %v660_v45 = vrot.slane %v3818_v39, %v3704_v26  ;;  %v664_v22 = vrot.slane %v3818_v39, %v3709_v28 }
  0xdd   :  { %v4117_v27 = vmax.f32 %v330_v11, 0.0  ;;  %v4121_v55 = vsel %vm293_vm12, %v294_v51, %v292_v38  ;;  %1683 = vperm.xlu0 %3499, %v1268_v52   ;;  %v1113_v2 = vrot.slane %v1105_v16, %v3731_v35  ;;  %3528 = vrsqrt.f32 %v4107_v43 }
  0xde   :  { %v1120_v4 = vrot.slane %v1106_v7, %v3731_v35  ;;  %v308_v5 = vand.u32 2147483648, %v4107_v43  ;;  %v668_v57 = vrot.slane %v3818_v39, %v3712_v29  ;;  %v672_v19 = vrot.slane %v3818_v39, %v3715_v30 }
  0xdf   :  { %v676_v59 = vrot.slane %v3818_v39, %v3719_v31  ;;  %v680_v37 = vrot.slane %v3818_v39, %v3722_v32  ;;  %v684_v3 = vrot.slane %v3818_v39, %v3725_v33  ;;  %v1318_v49 = vcombine.low %v656_v44, %v660_v45 }
  0xe0   :  { %v1121_v46 = vcombine.low %v1113_v2, %v1120_v4  ;;  %v1319_v60 = vcombine.low %v664_v22, %v668_v57  ;;  %v560_v62 = vrot.slane %v3786_v1, %v3701_v25  ;;  %v564_v0 = vrot.slane %v3786_v1, %v3704_v26 }
  0xe1   :  { %vm305_vm13 = vcmp.eq.f32.partialorder %v4107_v43, inf  ;;  %v1320_v10 = vcombine.low %v672_v19, %v676_v59  ;;  %v1321_v51 = vcombine.low %v680_v37, %v684_v3  ;;  %v1328_v36 = vrot.slane %v1318_v49, %v3731_v35 }
  0xe2   :  { %v568_v53 = vrot.slane %v3786_v1, %v3709_v28  ;;  %1674 = vperm.xlu1 %3498, %v1121_v46   ;;  %vm307_vm14 = vcmp.eq.f32.partialorder %v4107_v43, 0.0  ;;  %v1335_v39 = vrot.slane %v1319_v60, %v3731_v35  ;;  %v572_v11 = vrot.slane %v3786_v1, %v3712_v29 }
  0xe3   :  { %v576_v21 = vrot.slane %v3786_v1, %v3715_v30  ;;  %v580_v8 = vrot.slane %v3786_v1, %v3719_v31  ;;  %v1342_v50 = vrot.slane %v1320_v10, %v3731_v35  ;;  %v1349_v38 = vrot.slane %v1321_v51, %v3731_v35 }
  0xe4   :  { %v584_v42 = vrot.slane %v3786_v1, %v3722_v32  ;;  %v588_v18 = vrot.slane %v3786_v1, %v3725_v33  ;;  %v1350_v52 = vcombine.low %v1328_v36, %v1335_v39  ;;  %v1171_v16 = vcombine.low %v560_v62, %v564_v0 }
  0xe5   :  { %v1172_v44 = vcombine.low %v568_v53, %v572_v11  ;;  %v1173_v7 = vcombine.low %v576_v21, %v580_v8  ;;  %v1351_v45 = vcombine.low %v1342_v50, %v1349_v38  ;;  %v720_v2 = vrot.slane %v3947_v9, %v3701_v25 }
  0xe6   :  { %v1174_v22 = vcombine.low %v584_v42, %v588_v18  ;;  %v724_v4 = vrot.slane %v3947_v9, %v3704_v26  ;;  %v1358_v57 = vrot.slane %v1350_v52, %v3731_v35  ;;  %v1181_v19 = vrot.slane %v1171_v16, %v3731_v35 }
  0xe7   :  { %v1188_v59 = vrot.slane %v1172_v44, %v3731_v35  ;;  %v1195_v1 = vrot.slane %v1173_v7, %v3731_v35  ;;  %v3529_v37 = vpop.eup %3528  ;;  %v1365_v3 = vrot.slane %v1351_v45, %v3731_v35  ;;  %v728_v46 = vrot.slane %v3947_v9, %v3709_v28 }
  0xe8   :  { %v1202_v49 = vrot.slane %v1174_v22, %v3731_v35  ;;  %v732_v60 = vrot.slane %v3947_v9, %v3712_v29  ;;  %v304_v62 = vmul.f32 %v3529_v37, %v4107_v43  ;;  %v736_v10 = vrot.slane %v3947_v9, %v3715_v30 }
  0xe9   :  { %v1203_v0 = vcombine.low %v1181_v19, %v1188_v59  ;;  %v740_v51 = vrot.slane %v3947_v9, %v3719_v31  ;;  %v1366_v36 = vcombine.low %v1358_v57, %v1365_v3  ;;  %v744_v39 = vrot.slane %v3947_v9, %v3722_v32 }
  0xea   :  { %v1204_v53 = vcombine.low %v1195_v1, %v1202_v49  ;;  %v748_v11 = vrot.slane %v3947_v9, %v3725_v33  ;;  %v306_v21 = vsel %vm305_vm13, %v4107_v43, %v304_v62  ;;  %v1416_v50 = vcombine.low %v720_v2, %v724_v4 }
  0xeb   :  { %v1211_v8 = vrot.slane %v1203_v0, %v3731_v35  ;;  %v1417_v38 = vcombine.low %v728_v46, %v732_v60  ;;  %v4188_v42 = vsel %vm307_vm14, %v308_v5, %v306_v21  ;;  %1689 = vperm.xlu0 %3499, %v1366_v36   ;;  %v1418_v52 = vcombine.low %v736_v10, %v740_v51 }
  0xec   :  { %v1218_v18 = vrot.slane %v1204_v53, %v3731_v35  ;;  %v1419_v16 = vcombine.low %v744_v39, %v748_v11  ;;  %v329_v44 = vsub.f32 1.0, %v4121_v55  ;;  %v1426_v9 = vrot.slane %v1416_v50, %v3731_v35 }
  0xed   :  { %v1433_v7 = vrot.slane %v1417_v38, %v3731_v35  ;;  %v624_v45 = vrot.slane %v3820_v23, %v3701_v25  ;;  %v1440_v2 = vrot.slane %v1418_v52, %v3731_v35  ;;  %v628_v5 = vrot.slane %v3820_v23, %v3704_v26 }
  0xee   :  { %v1219_v22 = vcombine.low %v1211_v8, %v1218_v18  ;;  %v1447_v43 = vrot.slane %v1419_v16, %v3731_v35  ;;  %v331_v4 = vsub.f32 1.0, %v4188_v42  ;;  %v632_v19 = vrot.slane %v3820_v23, %v3709_v28 }
  0xef   :  { %v1448_v57 = vcombine.low %v1426_v9, %v1433_v7  ;;  %v636_v59 = vrot.slane %v3820_v23, %v3712_v29  ;;  %v640_v37 = vrot.slane %v3820_v23, %v3715_v30  ;;  %v644_v3 = vrot.slane %v3820_v23, %v3719_v31 }
  0xf0   :  { %1680 = vperm.xlu1 %3498, %v1219_v22   ;;  %v1449_v1 = vcombine.low %v1440_v2, %v1447_v43  ;;  %v648_v49 = vrot.slane %v3820_v23, %v3722_v32  ;;  %v652_v60 = vrot.slane %v3820_v23, %v3725_v33  ;;  %v1269_v62 = vcombine.low %v624_v45, %v628_v5 }
  0xf1   :  { %v1456_v46 = vrot.slane %v1448_v57, %v3731_v35  ;;  %v1270_v0 = vcombine.low %v632_v19, %v636_v59  ;;  %v1271_v51 = vcombine.low %v640_v37, %v644_v3  ;;  %v784_v36 = vrot.slane %v4011_v54, %v3701_v25 }
  0xf2   :  { %v1463_v10 = vrot.slane %v1449_v1, %v3731_v35  ;;  %v788_v53 = vrot.slane %v4011_v54, %v3704_v26  ;;  %v1272_v39 = vcombine.low %v648_v49, %v652_v60  ;;  %v1279_v11 = vrot.slane %v1269_v62, %v3731_v35 }
  0xf3   :  { %v1286_v21 = vrot.slane %v1270_v0, %v3731_v35  ;;  %v792_v8 = vrot.slane %v4011_v54, %v3709_v28  ;;  %v1293_v50 = vrot.slane %v1271_v51, %v3731_v35  ;;  %v796_v38 = vrot.slane %v4011_v54, %v3712_v29 }
  0xf4   :  { %v1464_v23 = vcombine.low %v1456_v46, %v1463_v10  ;;  %v800_v18 = vrot.slane %v4011_v54, %v3715_v30  ;;  %v1300_v52 = vrot.slane %v1272_v39, %v3731_v35  ;;  %v804_v9 = vrot.slane %v4011_v54, %v3719_v31 }
  0xf5   :  { %v1301_v16 = vcombine.low %v1279_v11, %v1286_v21  ;;  %v808_v7 = vrot.slane %v4011_v54, %v3722_v32  ;;  %v812_v45 = vrot.slane %v4011_v54, %v3725_v33  ;;  %v1514_v22 = vcombine.low %v784_v36, %v788_v53 }
  0xf6   :  { %1695 = vperm.xlu0 %3499, %v1464_v23   ;;  %v1515_v2 = vcombine.low %v792_v8, %v796_v38  ;;  %v688_v43 = vrot.slane %v3938_v6, %v3701_v25  ;;  %v1302_v5 = vcombine.low %v1293_v50, %v1300_v52  ;;  %v1516_v19 = vcombine.low %v800_v18, %v804_v9 }
  0xf7   :  { %v1309_v57 = vrot.slane %v1301_v16, %v3731_v35  ;;  %v692_v59 = vrot.slane %v3938_v6, %v3704_v26  ;;  %v1517_v1 = vcombine.low %v808_v7, %v812_v45  ;;  %v1524_v37 = vrot.slane %v1514_v22, %v3731_v35 }
  0xf8   :  { %v1531_v3 = vrot.slane %v1515_v2, %v3731_v35  ;;  %v696_v54 = vrot.slane %v3938_v6, %v3709_v28  ;;  %v1316_v49 = vrot.slane %v1302_v5, %v3731_v35  ;;  %v1538_v46 = vrot.slane %v1516_v19, %v3731_v35 }
  0xf9   :  { %v700_v60 = vrot.slane %v3938_v6, %v3712_v29  ;;  %v704_v62 = vrot.slane %v3938_v6, %v3715_v30  ;;  %v1545_v0 = vrot.slane %v1517_v1, %v3731_v35  ;;  %v708_v51 = vrot.slane %v3938_v6, %v3719_v31 }
  0xfa   :  { %v1546_v10 = vcombine.low %v1524_v37, %v1531_v3  ;;  %v712_v36 = vrot.slane %v3938_v6, %v3722_v32  ;;  %v1317_v53 = vcombine.low %v1309_v57, %v1316_v49  ;;  %v716_v39 = vrot.slane %v3938_v6, %v3725_v33 }
  0xfb   :  { %v1367_v11 = vcombine.low %v688_v43, %v692_v59  ;;  %v1368_v21 = vcombine.low %v696_v54, %v700_v60  ;;  %v1547_v8 = vcombine.low %v1538_v46, %v1545_v0  ;;  %v1369_v50 = vcombine.low %v704_v62, %v708_v51 }
  0xfc   :  { %v1554_v23 = vrot.slane %v1546_v10, %v3731_v35  ;;  %v1856_v38 = vrot.slane %v3865_v15, %v3701_v25  ;;  %1686 = vperm.xlu1 %3498, %v1317_v53   ;;  %v1370_v18 = vcombine.low %v712_v36, %v716_v39  ;;  %v1860_v9 = vrot.slane %v3865_v15, %v3704_v26 }
  0xfd   :  { %v1377_v52 = vrot.slane %v1367_v11, %v3731_v35  ;;  %v1384_v16 = vrot.slane %v1368_v21, %v3731_v35  ;;  %v1561_v6 = vrot.slane %v1547_v8, %v3731_v35  ;;  %v1391_v7 = vrot.slane %v1369_v50, %v3731_v35 }
  0xfe   :  { %v1864_v45 = vrot.slane %v3865_v15, %v3709_v28  ;;  %v1868_v22 = vrot.slane %v3865_v15, %v3712_v29  ;;  %v1398_v2 = vrot.slane %v1370_v18, %v3731_v35  ;;  %v1872_v5 = vrot.slane %v3865_v15, %v3715_v30 }
  0xff   :  { %v1399_v43 = vcombine.low %v1377_v52, %v1384_v16  ;;  %v1876_v57 = vrot.slane %v3865_v15, %v3719_v31  ;;  %v1562_v19 = vcombine.low %v1554_v23, %v1561_v6  ;;  %v1880_v59 = vrot.slane %v3865_v15, %v3722_v32 }
 0x100   :  { %v1884_v1 = vrot.slane %v3865_v15, %v3725_v33  ;;  %v2365_v37 = vcombine.low %v1856_v38, %v1860_v9  ;;  %v1400_v3 = vcombine.low %v1391_v7, %v1398_v2  ;;  %v2366_v49 = vcombine.low %v1864_v45, %v1868_v22 }
 0x101   :  { %v1407_v54 = vrot.slane %v1399_v43, %v3731_v35  ;;  %v2367_v46 = vcombine.low %v1872_v5, %v1876_v57  ;;  %1701 = vperm.xlu0 %3499, %v1562_v19   ;;  %v752_v0 = vrot.slane %v4004_v56, %v3701_v25  ;;  %v756_v10 = vrot.slane %v4004_v56, %v3704_v26 }
 0x102   :  { %v2368_v60 = vcombine.low %v1880_v59, %v1884_v1  ;;  %v2375_v62 = vrot.slane %v2365_v37, %v3731_v35  ;;  %v1414_v51 = vrot.slane %v1400_v3, %v3731_v35  ;;  %v2382_v15 = vrot.slane %v2366_v49, %v3731_v35 }
 0x103   :  { %v2389_v36 = vrot.slane %v2367_v46, %v3731_v35  ;;  %v760_v53 = vrot.slane %v4004_v56, %v3709_v28  ;;  %v764_v11 = vrot.slane %v4004_v56, %v3712_v29  ;;  %v768_v21 = vrot.slane %v4004_v56, %v3715_v30 }
 0x104   :  { %v2396_v39 = vrot.slane %v2368_v60, %v3731_v35  ;;  %v772_v8 = vrot.slane %v4004_v56, %v3719_v31  ;;  %v1415_v23 = vcombine.low %v1407_v54, %v1414_v51  ;;  %v2397_v50 = vcombine.low %v2375_v62, %v2382_v15 }
 0x105   :  { %v776_v38 = vrot.slane %v4004_v56, %v3722_v32  ;;  %v780_v18 = vrot.slane %v4004_v56, %v3725_v33  ;;  %v1465_v16 = vcombine.low %v752_v0, %v756_v10  ;;  %v1466_v9 = vcombine.low %v760_v53, %v764_v11 }
 0x106   :  { %v2398_v52 = vcombine.low %v2389_v36, %v2396_v39  ;;  %v1467_v6 = vcombine.low %v768_v21, %v772_v8  ;;  %1692 = vperm.xlu1 %3498, %v1415_v23   ;;  %v2405_v7 = vrot.slane %v2397_v50, %v3731_v35  ;;  %v1984_v22 = vrot.slane %v3949_v34, %v3701_v25 }
 0x107   :  { %v1468_v45 = vcombine.low %v776_v38, %v780_v18  ;;  %v1988_v2 = vrot.slane %v3949_v34, %v3704_v26  ;;  %v1475_v5 = vrot.slane %v1465_v16, %v3731_v35  ;;  %v1482_v56 = vrot.slane %v1466_v9, %v3731_v35 }
 0x108   :  { %v2412_v43 = vrot.slane %v2398_v52, %v3731_v35  ;;  %v1489_v57 = vrot.slane %v1467_v6, %v3731_v35  ;;  %v1992_v59 = vrot.slane %v3949_v34, %v3709_v28  ;;  %v1996_v1 = vrot.slane %v3949_v34, %v3712_v29 }
 0x109   :  { %v1496_v19 = vrot.slane %v1468_v45, %v3731_v35  ;;  %v2000_v37 = vrot.slane %v3949_v34, %v3715_v30  ;;  %v1497_v54 = vcombine.low %v1475_v5, %v1482_v56  ;;  %v2004_v49 = vrot.slane %v3949_v34, %v3719_v31 }
 0x10a   :  { %v4317_v3 = vcombine.low %v2405_v7, %v2412_v43  ;;  %v2008_v46 = vrot.slane %v3949_v34, %v3722_v32  ;;  %v2012_v62 = vrot.slane %v3949_v34, %v3725_v33  ;;  %v2561_v0 = vcombine.low %v1984_v22, %v1988_v2 }
 0x10b   :  { %v1498_v60 = vcombine.low %v1489_v57, %v1496_v19  ;;  %v2562_v10 = vcombine.low %v1992_v59, %v1996_v1  ;;  %v1505_v51 = vrot.slane %v1497_v54, %v3731_v35  ;;  %v2563_v15 = vcombine.low %v2000_v37, %v2004_v49 }
 0x10c   :  { %3150 = vperm.xlu0 %3499, %v4317_v3   ;;  %v816_v36 = vrot.slane %v4094_v41, %v3701_v25  ;;  %v820_v53 = vrot.slane %v4094_v41, %v3704_v26  ;;  %v2564_v11 = vcombine.low %v2008_v46, %v2012_v62  ;;  %v2571_v21 = vrot.slane %v2561_v0, %v3731_v35 }
 0x10d   :  { %v1512_v39 = vrot.slane %v1498_v60, %v3731_v35  ;;  %v2578_v34 = vrot.slane %v2562_v10, %v3731_v35  ;;  %v2585_v8 = vrot.slane %v2563_v15, %v3731_v35  ;;  %v824_v23 = vrot.slane %v4094_v41, %v3709_v28 }
 0x10e   :  { %v828_v50 = vrot.slane %v4094_v41, %v3712_v29  ;;  %v832_v38 = vrot.slane %v4094_v41, %v3715_v30  ;;  %v2592_v52 = vrot.slane %v2564_v11, %v3731_v35  ;;  %v836_v9 = vrot.slane %v4094_v41, %v3719_v31 }
 0x10f   :  { %v1513_v18 = vcombine.low %v1505_v51, %v1512_v39  ;;  %v2593_v16 = vcombine.low %v2571_v21, %v2578_v34  ;;  %v840_v6 = vrot.slane %v4094_v41, %v3722_v32  ;;  %v844_v7 = vrot.slane %v4094_v41, %v3725_v33 }
 0x110   :  { %v1563_v45 = vcombine.low %v816_v36, %v820_v53  ;;  %v1564_v22 = vcombine.low %v824_v23, %v828_v50  ;;  %v2594_v2 = vcombine.low %v2585_v8, %v2592_v52  ;;  %v1565_v5 = vcombine.low %v832_v38, %v836_v9 }
 0x111   :  { %1698 = vperm.xlu1 %3498, %v1513_v18   ;;  %v2601_v43 = vrot.slane %v2593_v16, %v3731_v35  ;;  %v1952_v56 = vrot.slane %v3869_v24, %v3701_v25  ;;  %v1566_v57 = vcombine.low %v840_v6, %v844_v7  ;;  %v1956_v1 = vrot.slane %v3869_v24, %v3704_v26 }
 0x112   :  { %v1573_v19 = vrot.slane %v1563_v45, %v3731_v35  ;;  %v1580_v59 = vrot.slane %v1564_v22, %v3731_v35  ;;  %v2608_v41 = vrot.slane %v2594_v2, %v3731_v35  ;;  %v1587_v37 = vrot.slane %v1565_v5, %v3731_v35 }
 0x113   :  { %v1960_v54 = vrot.slane %v3869_v24, %v3709_v28  ;;  %v1964_v49 = vrot.slane %v3869_v24, %v3712_v29  ;;  %v1594_v46 = vrot.slane %v1566_v57, %v3731_v35  ;;  %v1968_v62 = vrot.slane %v3869_v24, %v3715_v30 }
 0x114   :  { %v1595_v60 = vcombine.low %v1573_v19, %v1580_v59  ;;  %v1972_v0 = vrot.slane %v3869_v24, %v3719_v31  ;;  %v4366_v10 = vcombine.low %v2601_v43, %v2608_v41  ;;  %v1976_v51 = vrot.slane %v3869_v24, %v3722_v32 }
 0x115   :  { %v1980_v15 = vrot.slane %v3869_v24, %v3725_v33  ;;  %v2512_v36 = vcombine.low %v1952_v56, %v1956_v1  ;;  %v1596_v53 = vcombine.low %v1587_v37, %v1594_v46  ;;  %v2513_v11 = vcombine.low %v1960_v54, %v1964_v49 }
 0x116   :  { %v1603_v39 = vrot.slane %v1595_v60, %v3731_v35  ;;  %v2514_v21 = vcombine.low %v1968_v62, %v1972_v0  ;;  %3162 = vperm.xlu0 %3499, %v4366_v10   ;;  %v1888_v23 = vrot.slane %v3883_v48, %v3701_v25  ;;  %v1892_v50 = vrot.slane %v3883_v48, %v3704_v26 }
 0x117   :  { %v2515_v34 = vcombine.low %v1976_v51, %v1980_v15  ;;  %v2522_v8 = vrot.slane %v2512_v36, %v3731_v35  ;;  %v1610_v38 = vrot.slane %v1596_v53, %v3731_v35  ;;  %v2529_v24 = vrot.slane %v2513_v11, %v3731_v35 }
 0x118   :  { %v2536_v18 = vrot.slane %v2514_v21, %v3731_v35  ;;  %v1896_v52 = vrot.slane %v3883_v48, %v3709_v28  ;;  %v1900_v9 = vrot.slane %v3883_v48, %v3712_v29  ;;  %v1904_v6 = vrot.slane %v3883_v48, %v3715_v30 }
 0x119   :  { %v2543_v16 = vrot.slane %v2515_v34, %v3731_v35  ;;  %v1908_v7 = vrot.slane %v3883_v48, %v3719_v31  ;;  %v1611_v45 = vcombine.low %v1603_v39, %v1610_v38  ;;  %v2544_v22 = vcombine.low %v2522_v8, %v2529_v24 }
 0x11a   :  { %v1912_v2 = vrot.slane %v3883_v48, %v3722_v32  ;;  %v1916_v43 = vrot.slane %v3883_v48, %v3725_v33  ;;  %v2414_v56 = vcombine.low %v1888_v23, %v1892_v50  ;;  %v2415_v57 = vcombine.low %v1896_v52, %v1900_v9 }
 0x11b   :  { %v2545_v5 = vcombine.low %v2536_v18, %v2543_v16  ;;  %v2416_v19 = vcombine.low %v1904_v6, %v1908_v7  ;;  %1704 = vperm.xlu1 %3498, %v1611_v45   ;;  %v2552_v59 = vrot.slane %v2544_v22, %v3731_v35  ;;  %v2048_v41 = vrot.slane %v3969_v12, %v3701_v25 }
 0x11c   :  { %v2417_v1 = vcombine.low %v1912_v2, %v1916_v43  ;;  %v2052_v37 = vrot.slane %v3969_v12, %v3704_v26  ;;  %v2424_v49 = vrot.slane %v2414_v56, %v3731_v35  ;;  %v2431_v48 = vrot.slane %v2415_v57, %v3731_v35 }
 0x11d   :  { %v2559_v54 = vrot.slane %v2545_v5, %v3731_v35  ;;  %v2438_v46 = vrot.slane %v2416_v19, %v3731_v35  ;;  %v2056_v62 = vrot.slane %v3969_v12, %v3709_v28  ;;  %v2060_v0 = vrot.slane %v3969_v12, %v3712_v29 }
 0x11e   :  { %v2445_v60 = vrot.slane %v2417_v1, %v3731_v35  ;;  %v2064_v51 = vrot.slane %v3969_v12, %v3715_v30  ;;  %v2446_v36 = vcombine.low %v2424_v49, %v2431_v48  ;;  %v2068_v53 = vrot.slane %v3969_v12, %v3719_v31 }
 0x11f   :  { %v4411_v15 = vcombine.low %v2552_v59, %v2559_v54  ;;  %v2072_v39 = vrot.slane %v3969_v12, %v3722_v32  ;;  %v2076_v21 = vrot.slane %v3969_v12, %v3725_v33  ;;  %v2659_v34 = vcombine.low %v2048_v41, %v2052_v37 }
 0x120   :  { %v2447_v11 = vcombine.low %v2438_v46, %v2445_v60  ;;  %v2660_v8 = vcombine.low %v2056_v62, %v2060_v0  ;;  %v2454_v23 = vrot.slane %v2446_v36, %v3731_v35  ;;  %v2661_v50 = vcombine.low %v2064_v51, %v2068_v53 }
 0x121   :  { %3302 = vperm.xlu0 %3499, %v4411_v15   ;;  %v1920_v38 = vrot.slane %v3863_v14, %v3701_v25  ;;  %v1924_v24 = vrot.slane %v3863_v14, %v3704_v26  ;;  %v2662_v52 = vcombine.low %v2072_v39, %v2076_v21  ;;  %v2669_v16 = vrot.slane %v2659_v34, %v3731_v35 }
 0x122   :  { %v2461_v18 = vrot.slane %v2447_v11, %v3731_v35  ;;  %v2676_v12 = vrot.slane %v2660_v8, %v3731_v35  ;;  %v2683_v9 = vrot.slane %v2661_v50, %v3731_v35  ;;  %v1928_v6 = vrot.slane %v3863_v14, %v3709_v28 }
 0x123   :  { %v1932_v7 = vrot.slane %v3863_v14, %v3712_v29  ;;  %v1936_v45 = vrot.slane %v3863_v14, %v3715_v30  ;;  %v2690_v2 = vrot.slane %v2662_v52, %v3731_v35  ;;  %v1940_v5 = vrot.slane %v3863_v14, %v3719_v31 }
 0x124   :  { %v4435_v22 = vcombine.low %v2454_v23, %v2461_v18  ;;  %v2691_v43 = vcombine.low %v2669_v16, %v2676_v12  ;;  %v1944_v56 = vrot.slane %v3863_v14, %v3722_v32  ;;  %v1948_v57 = vrot.slane %v3863_v14, %v3725_v33 }
 0x125   :  { %v2463_v19 = vcombine.low %v1920_v38, %v1924_v24  ;;  %v2464_v59 = vcombine.low %v1928_v6, %v1932_v7  ;;  %v2692_v1 = vcombine.low %v2683_v9, %v2690_v2  ;;  %v2465_v37 = vcombine.low %v1936_v45, %v1940_v5 }
 0x126   :  { %3153 = vperm.xlu1 %3498, %v4435_v22   ;;  %v2699_v41 = vrot.slane %v2691_v43, %v3731_v35  ;;  %v2016_v54 = vrot.slane %v3899_v58, %v3701_v25  ;;  %v2466_v49 = vcombine.low %v1944_v56, %v1948_v57  ;;  %v2020_v60 = vrot.slane %v3899_v58, %v3704_v26  ;;  %v4488_v57 = vpop.xlane.xlu1 %186 }
 0x127   :  { %v2473_v48 = vrot.slane %v2463_v19, %v3731_v35  ;;  %v2480_v46 = vrot.slane %v2464_v59, %v3731_v35  ;;  %v2706_v14 = vrot.slane %v2692_v1, %v3731_v35  ;;  %v2487_v62 = vrot.slane %v2465_v37, %v3731_v35 }
 0x128   :  { %v2024_v0 = vrot.slane %v3899_v58, %v3709_v28  ;;  %v2028_v51 = vrot.slane %v3899_v58, %v3712_v29  ;;  %v2494_v36 = vrot.slane %v2466_v49, %v3731_v35  ;;  %v2032_v39 = vrot.slane %v3899_v58, %v3715_v30 }
 0x129   :  { %v2495_v53 = vcombine.low %v2473_v48, %v2480_v46  ;;  %v2036_v11 = vrot.slane %v3899_v58, %v3719_v31  ;;  %v4463_v21 = vcombine.low %v2699_v41, %v2706_v14  ;;  %v2040_v34 = vrot.slane %v3899_v58, %v3722_v32 }
 0x12a   :  { %v2044_v8 = vrot.slane %v3899_v58, %v3725_v33  ;;  %v2610_v23 = vcombine.low %v2016_v54, %v2020_v60  ;;  %v2496_v50 = vcombine.low %v2487_v62, %v2494_v36  ;;  %v2611_v24 = vcombine.low %v2024_v0, %v2028_v51 }
 0x12b   :  { %v2503_v38 = vrot.slane %v2495_v53, %v3731_v35  ;;  %v2612_v18 = vcombine.low %v2032_v39, %v2036_v11  ;;  %3168 = vperm.xlu0 %3499, %v4463_v21   ;;  %v2112_v12 = vrot.slane %v4029_v47, %v3701_v25  ;;  %v2116_v9 = vrot.slane %v4029_v47, %v3704_v26 }
 0x12c   :  { %v2613_v52 = vcombine.low %v2040_v34, %v2044_v8  ;;  %v2620_v16 = vrot.slane %v2610_v23, %v3731_v35  ;;  %v2510_v6 = vrot.slane %v2496_v50, %v3731_v35  ;;  %v2627_v58 = vrot.slane %v2611_v24, %v3731_v35 }
 0x12d   :  { %v2634_v7 = vrot.slane %v2612_v18, %v3731_v35  ;;  %v2120_v45 = vrot.slane %v4029_v47, %v3709_v28  ;;  %v2124_v43 = vrot.slane %v4029_v47, %v3712_v29  ;;  %v2128_v5 = vrot.slane %v4029_v47, %v3715_v30 }
 0x12e   :  { %v2641_v2 = vrot.slane %v2613_v52, %v3731_v35  ;;  %v2132_v56 = vrot.slane %v4029_v47, %v3719_v31  ;;  %v4490_v19 = vcombine.low %v2503_v38, %v2510_v6  ;;  %v2642_v59 = vcombine.low %v2620_v16, %v2627_v58 }
 0x12f   :  { %v2136_v1 = vrot.slane %v4029_v47, %v3722_v32  ;;  %v2140_v41 = vrot.slane %v4029_v47, %v3725_v33  ;;  %v2757_v54 = vcombine.low %v2112_v12, %v2116_v9  ;;  %v2758_v49 = vcombine.low %v2120_v45, %v2124_v43 }
 0x130   :  { %v2643_v37 = vcombine.low %v2634_v7, %v2641_v2  ;;  %v2759_v48 = vcombine.low %v2128_v5, %v2132_v56  ;;  %v4498_v46 = vmax.f32 %v329_v44, 0.0  ;;  %3156 = vperm.xlu1 %3498, %v4490_v19   ;;  %v2650_v60 = vrot.slane %v2642_v59, %v3731_v35 }
 0x131   :  { %v2760_v14 = vcombine.low %v2136_v1, %v2140_v41  ;;  %v4503_v62 = vadd.f32 1e-09, %v4488_v57  ;;  %v2767_v47 = vrot.slane %v2757_v54, %v3731_v35  ;;  %v2774_v51 = vrot.slane %v2758_v49, %v3731_v35 }
 0x132   :  { %v2657_v0 = vrot.slane %v2643_v37, %v3731_v35  ;;  %v2781_v36 = vrot.slane %v2759_v48, %v3731_v35  ;;  %v4511_v55 = vmax.f32 %v331_v4, 0.0  ;;  %v2080_v53 = vrot.slane %v3957_v40, %v3701_v25 }
 0x133   :  { %v2788_v44 = vrot.slane %v2760_v14, %v3731_v35  ;;  %3530 = vrsqrt.f32 %v4503_v62  ;;  %v2789_v11 = vcombine.low %v2767_v47, %v2774_v51  ;;  %v315_v34 = vand.u32 2147483648, %v4503_v62 }
 0x134   :  { %v4517_v39 = vcombine.low %v2650_v60, %v2657_v0  ;;  %v2084_v8 = vrot.slane %v3957_v40, %v3704_v26  ;;  %3159 = vperm.xlu1 %3498, %v4411_v15   ;;  %vm312_vm15 = vcmp.eq.f32.partialorder %v4503_v62, inf  ;;  %v2088_v4 = vrot.slane %v3957_v40, %v3709_v28 }
 0x135   :  { %v2790_v42 = vcombine.low %v2781_v36, %v2788_v44  ;;  %v2092_v23 = vrot.slane %v3957_v40, %v3712_v29  ;;  %v2096_v50 = vrot.slane %v3957_v40, %v3715_v30  ;;  %v2797_v38 = vrot.slane %v2789_v11, %v3731_v35 }
 0x136   :  { %3308 = vperm.xlu0 %3499, %v4517_v39   ;;  %vm314_vm0 = vcmp.eq.f32.partialorder %v4503_v62, 0.0  ;;  %v2100_v15 = vrot.slane %v3957_v40, %v3719_v31  ;;  %v2104_v24 = vrot.slane %v3957_v40, %v3722_v32  ;;  %v2108_v18 = vrot.slane %v3957_v40, %v3725_v33 }
 0x137   :  { %v2804_v52 = vrot.slane %v2790_v42, %v3731_v35  ;;  %v2708_v16 = vcombine.low %v2080_v53, %v2084_v8  ;;  %v2709_v12 = vcombine.low %v2088_v4, %v2092_v23  ;;  %v2176_v9 = vrot.slane %v4111_v61, %v3701_v25 }
 0x138   :  { %v2710_v6 = vcombine.low %v2096_v50, %v2100_v15  ;;  %v2711_v58 = vcombine.low %v2104_v24, %v2108_v18  ;;  %v2180_v7 = vrot.slane %v4111_v61, %v3704_v26  ;;  %v2184_v45 = vrot.slane %v4111_v61, %v3709_v28  ;;  %3293 = vperm.xlu1 %3498, %v4317_v3  }
 0x139   :  { %v4546_v2 = vcombine.low %v2797_v38, %v2804_v52  ;;  %v2718_v40 = vrot.slane %v2708_v16, %v3731_v35  ;;  %v2725_v43 = vrot.slane %v2709_v12, %v3731_v35  ;;  %v2188_v5 = vrot.slane %v4111_v61, %v3712_v29 }
 0x13a   :  { %v2732_v56 = vrot.slane %v2710_v6, %v3731_v35  ;;  %v2739_v59 = vrot.slane %v2711_v58, %v3731_v35  ;;  %v2192_v1 = vrot.slane %v4111_v61, %v3715_v30  ;;  %v2196_v41 = vrot.slane %v4111_v61, %v3719_v31 }
 0x13b   :  { %3174 = vperm.xlu0 %3499, %v4546_v2   ;;  %v2740_v3 = vcombine.low %v2718_v40, %v2725_v43  ;;  %v2200_v37 = vrot.slane %v4111_v61, %v3722_v32  ;;  %v2204_v54 = vrot.slane %v4111_v61, %v3725_v33  ;;  %v2855_v49 = vcombine.low %v2176_v9, %v2180_v7 }
 0x13c   :  { %v2741_v48 = vcombine.low %v2732_v56, %v2739_v59  ;;  %v2856_v60 = vcombine.low %v2184_v45, %v2188_v5  ;;  %v2857_v14 = vcombine.low %v2192_v1, %v2196_v41  ;;  %v2144_v0 = vrot.slane %v3971_v13, %v3701_v25  ;;  %3296 = vperm.xlu1 %3498, %v4435_v22  }
 0x13d   :  { %v3531_v47 = vpop.eup %3530  ;;  %v2748_v51 = vrot.slane %v2740_v3, %v3731_v35  ;;  %v2858_v36 = vcombine.low %v2200_v37, %v2204_v54  ;;  %v2865_v44 = vrot.slane %v2855_v49, %v3731_v35  ;;  %v2148_v53 = vrot.slane %v3971_v13, %v3704_v26 }
 0x13e   :  { %v311_v61 = vmul.f32 %v3531_v47, %v4503_v62  ;;  %v2755_v11 = vrot.slane %v2741_v48, %v3731_v35  ;;  %v2872_v8 = vrot.slane %v2856_v60, %v3731_v35  ;;  %v2879_v42 = vrot.slane %v2857_v14, %v3731_v35 }
 0x13f   :  { %v2886_v4 = vrot.slane %v2858_v36, %v3731_v35  ;;  %v2152_v23 = vrot.slane %v3971_v13, %v3709_v28  ;;  %v2156_v22 = vrot.slane %v3971_v13, %v3712_v29  ;;  %v2160_v50 = vrot.slane %v3971_v13, %v3715_v30 }
 0x140   :  { %v313_v38 = vsel %vm312_vm15, %v4503_v62, %v311_v61  ;;  %v2756_v15 = vcombine.low %v2748_v51, %v2755_v11  ;;  %v2887_v24 = vcombine.low %v2865_v44, %v2872_v8  ;;  %v2164_v18 = vrot.slane %v3971_v13, %v3719_v31  ;;  %3299 = vperm.xlu1 %3498, %v4490_v19  }
 0x141   :  { %v316_v52 = vsel %vm314_vm0, %v315_v34, %v313_v38  ;;  %v2888_v16 = vcombine.low %v2879_v42, %v2886_v4  ;;  %v2168_v12 = vrot.slane %v3971_v13, %v3722_v32  ;;  %v2172_v9 = vrot.slane %v3971_v13, %v3725_v33 }
 0x142   :  { %v332_v6 = vsub.f32 1.0, %v316_v52  ;;  %3314 = vperm.xlu0 %3499, %v2756_v15   ;;  %v2895_v58 = vrot.slane %v2887_v24, %v3731_v35  ;;  %v2806_v7 = vcombine.low %v2144_v0, %v2148_v53  ;;  %v2807_v45 = vcombine.low %v2152_v23, %v2156_v22 }
 0x143   :  { %v2902_v40 = vrot.slane %v2888_v16, %v3731_v35  ;;  %v2808_v43 = vcombine.low %v2160_v50, %v2164_v18  ;;  %v2809_v62 = vcombine.low %v2168_v12, %v2172_v9  ;;  %v2240_v34 = vrot.slane %v4498_v46, %v3701_v25 }
 0x144   :  { %v4598_v19 = vmax.f32 %v332_v6, 0.0  ;;  %v2816_v5 = vrot.slane %v2806_v7, %v3731_v35  ;;  %v2823_v56 = vrot.slane %v2807_v45, %v3731_v35  ;;  %v2244_v13 = vrot.slane %v4498_v46, %v3704_v26  ;;  %3165 = vperm.xlu1 %3498, %v4517_v39  }
 0x145   :  { %v4604_v59 = vcombine.low %v2895_v58, %v2902_v40  ;;  %v2830_v1 = vrot.slane %v2808_v43, %v3731_v35  ;;  %v2837_v41 = vrot.slane %v2809_v62, %v3731_v35  ;;  %v2248_v3 = vrot.slane %v4498_v46, %v3709_v28 }
 0x146   :  { %v2838_v37 = vcombine.low %v2816_v5, %v2823_v56  ;;  %v2252_v54 = vrot.slane %v4498_v46, %v3712_v29  ;;  %v2256_v49 = vrot.slane %v4498_v46, %v3715_v30  ;;  %v2260_v48 = vrot.slane %v4498_v46, %v3719_v31 }
 0x147   :  { %3180 = vperm.xlu0 %3499, %v4604_v59   ;;  %v2839_v60 = vcombine.low %v2830_v1, %v2837_v41  ;;  %v2264_v14 = vrot.slane %v4498_v46, %v3722_v32  ;;  %v2268_v39 = vrot.slane %v4498_v46, %v3725_v33  ;;  %v2953_v0 = vcombine.low %v2240_v34, %v2244_v13 }
 0x148   :  { %v2846_v47 = vrot.slane %v2838_v37, %v3731_v35  ;;  %v2954_v51 = vcombine.low %v2248_v3, %v2252_v54  ;;  %v2955_v36 = vcombine.low %v2256_v49, %v2260_v48  ;;  %v2208_v44 = vrot.slane %v4099_v63, %v3701_v25  ;;  %3305 = vperm.xlu1 %3498, %v4366_v10  }
 0x149   :  { %v2853_v53 = vrot.slane %v2839_v60, %v3731_v35  ;;  %v2956_v61 = vcombine.low %v2264_v14, %v2268_v39  ;;  %v2963_v11 = vrot.slane %v2953_v0, %v3731_v35  ;;  %v2212_v8 = vrot.slane %v4099_v63, %v3704_v26 }
 0x14a   :  { %v2970_v46 = vrot.slane %v2954_v51, %v3731_v35  ;;  %v2977_v42 = vrot.slane %v2955_v36, %v3731_v35  ;;  %v2216_v4 = vrot.slane %v4099_v63, %v3709_v28  ;;  %v2220_v23 = vrot.slane %v4099_v63, %v3712_v29 }
 0x14b   :  { %v2854_v22 = vcombine.low %v2846_v47, %v2853_v53  ;;  %v2984_v50 = vrot.slane %v2956_v61, %v3731_v35  ;;  %v2224_v38 = vrot.slane %v4099_v63, %v3715_v30  ;;  %v2228_v10 = vrot.slane %v4099_v63, %v3719_v31 }
 0x14c   :  { %v2985_v24 = vcombine.low %v2963_v11, %v2970_v46  ;;  %v2232_v18 = vrot.slane %v4099_v63, %v3722_v32  ;;  %v2236_v52 = vrot.slane %v4099_v63, %v3725_v33  ;;  %v2904_v16 = vcombine.low %v2208_v44, %v2212_v8  ;;  %3171 = vperm.xlu1 %3498, %v2756_v15  }
 0x14d   :  { %3320 = vperm.xlu0 %3499, %v2854_v22   ;;  %v2986_v12 = vcombine.low %v2977_v42, %v2984_v50  ;;  %v2905_v9 = vcombine.low %v2216_v4, %v2220_v23  ;;  %v2906_v6 = vcombine.low %v2224_v38, %v2228_v10  ;;  %v4646_v58 = vand.u32 127, %v365_v17 }
 0x14e   :  { %v2993_v7 = vrot.slane %v2985_v24, %v3731_v35  ;;  %v2907_v45 = vcombine.low %v2232_v18, %v2236_v52  ;;  %v2914_v40 = vrot.slane %v2904_v16, %v3731_v35  ;;  %v2304_v43 = vrot.slane %v4511_v55, %v3701_v25  ;;  %v4696_v24 = vpop.permute.xlu1 %1662 }
 0x14f   :  { %v3000_v62 = vrot.slane %v2986_v12, %v3731_v35  ;;  %v2921_v63 = vrot.slane %v2905_v9, %v3731_v35  ;;  %v2928_v34 = vrot.slane %v2906_v6, %v3731_v35  ;;  %v2308_v15 = vrot.slane %v4511_v55, %v3704_v26 }
 0x150   :  { %v2935_v17 = vrot.slane %v2907_v45, %v3731_v35  ;;  %v2312_v5 = vrot.slane %v4511_v55, %v3709_v28  ;;  %v2316_v56 = vrot.slane %v4511_v55, %v3712_v29  ;;  %v2320_v13 = vrot.slane %v4511_v55, %v3715_v30  ;;  %3311 = vperm.xlu1 %3498, %v4463_v21  }
 0x151   :  { %v4664_v1 = vcombine.low %v2993_v7, %v3000_v62  ;;  %v2936_v41 = vcombine.low %v2914_v40, %v2921_v63  ;;  %v2324_v3 = vrot.slane %v4511_v55, %v3719_v31  ;;  %v2328_v37 = vrot.slane %v4511_v55, %v3722_v32 }
 0x152   :  { %v2937_v54 = vcombine.low %v2928_v34, %v2935_v17  ;;  %v2332_v49 = vrot.slane %v4511_v55, %v3725_v33  ;;  %v3051_v48 = vcombine.low %v2304_v43, %v2308_v15  ;;  %v3052_v60 = vcombine.low %v2312_v5, %v2316_v56 }
 0x153   :  { %3186 = vperm.xlu0 %3499, %v4664_v1   ;;  %v2944_v14 = vrot.slane %v2936_v41, %v3731_v35  ;;  %v3053_v39 = vcombine.low %v2320_v13, %v2324_v3  ;;  %v2272_v0 = vrot.slane %v4117_v27, %v3701_v25  ;;  %v2276_v47 = vrot.slane %v4117_v27, %v3704_v26 }
 0x154   :  { %v2951_v51 = vrot.slane %v2937_v54, %v3731_v35  ;;  %v3054_v21 = vcombine.low %v2328_v37, %v2332_v49  ;;  %v3061_v36 = vrot.slane %v3051_v48, %v3731_v35  ;;  %v3068_v55 = vrot.slane %v3052_v60, %v3731_v35  ;;  %3177 = vperm.xlu1 %3498, %v2854_v22   ;;  %v1666_v54 = vpop.permute.xlu1 %1665 }
 0x155   :  { %v3075_v44 = vrot.slane %v3053_v39, %v3731_v35  ;;  %v2280_v53 = vrot.slane %v4117_v27, %v3709_v28  ;;  %v2284_v61 = vrot.slane %v4117_v27, %v3712_v29  ;;  %v2288_v11 = vrot.slane %v4117_v27, %v3715_v30 }
 0x156   :  { %v2952_v8 = vcombine.low %v2944_v14, %v2951_v51  ;;  %v3082_v46 = vrot.slane %v3054_v21, %v3731_v35  ;;  %v3083_v42 = vcombine.low %v3061_v36, %v3068_v55  ;;  %v2292_v4 = vrot.slane %v4117_v27, %v3719_v31 }
 0x157   :  { %v2296_v23 = vrot.slane %v4117_v27, %v3722_v32  ;;  %v2300_v50 = vrot.slane %v4117_v27, %v3725_v33  ;;  %v3002_v38 = vcombine.low %v2272_v0, %v2276_v47  ;;  %v3003_v10 = vcombine.low %v2280_v53, %v2284_v61 }
 0x158   :  { %3326 = vperm.xlu0 %3499, %v2952_v8   ;;  %v3084_v18 = vcombine.low %v3075_v44, %v3082_v46  ;;  %v3091_v22 = vrot.slane %v3083_v42, %v3731_v35  ;;  %v3004_v52 = vcombine.low %v2288_v11, %v2292_v4  ;;  %v2336_v16 = vrot.slane %v4598_v19, %v3701_v25  ;;  %v1669_v42 = vpop.permute.xlu1 %1668 }
 0x159   :  { %v3005_v12 = vcombine.low %v2296_v23, %v2300_v50  ;;  %v3012_v9 = vrot.slane %v3002_v38, %v3731_v35  ;;  %v3019_v6 = vrot.slane %v3003_v10, %v3731_v35  ;;  %3317 = vperm.xlu1 %3498, %v4546_v2   ;;  %v2340_v27 = vrot.slane %v4598_v19, %v3704_v26 }
 0x15a   :  { %v3098_v7 = vrot.slane %v3084_v18, %v3731_v35  ;;  %v3026_v45 = vrot.slane %v3004_v52, %v3731_v35  ;;  %v2344_v40 = vrot.slane %v4598_v19, %v3709_v28  ;;  %v2348_v43 = vrot.slane %v4598_v19, %v3712_v29 }
 0x15b   :  { %v3033_v62 = vrot.slane %v3005_v12, %v3731_v35  ;;  %v3034_v63 = vcombine.low %v3012_v9, %v3019_v6  ;;  %v2352_v34 = vrot.slane %v4598_v19, %v3715_v30  ;;  %v2356_v2 = vrot.slane %v4598_v19, %v3719_v31 }
 0x15c   :  { %v3099_v15 = vcombine.low %v3091_v22, %v3098_v7  ;;  %v2360_v17 = vrot.slane %v4598_v19, %v3722_v32  ;;  %v2364_v5 = vrot.slane %v4598_v19, %v3725_v33  ;;  %v3100_v56 = vcombine.low %v2336_v16, %v2340_v27 }
 0x15d   :  { %v3035_v13 = vcombine.low %v3026_v45, %v3033_v62  ;;  %v3042_v41 = vrot.slane %v3034_v63, %v3731_v35  ;;  %v3101_v3 = vcombine.low %v2344_v40, %v2348_v43  ;;  %v3102_v37 = vcombine.low %v2352_v34, %v2356_v2  ;;  %3183 = vperm.xlu1 %3498, %v2952_v8   ;;  %v1672_v8 = vpop.permute.xlu0 %1671 }
 0x15e   :  { %3192 = vperm.xlu0 %3499, %v3099_v15   ;;  %v3103_v49 = vcombine.low %v2360_v17, %v2364_v5  ;;  %v3110_v48 = vrot.slane %v3100_v56, %v3731_v35  ;;  %v848_v60 = vrot.slane %v4488_v57, %v3701_v25  ;;  %v852_v14 = vrot.slane %v4488_v57, %v3704_v26 }
 0x15f   :  { %v3049_v19 = vrot.slane %v3035_v13, %v3731_v35  ;;  %v3117_v39 = vrot.slane %v3101_v3, %v3731_v35  ;;  %v3124_v0 = vrot.slane %v3102_v37, %v3731_v35  ;;  %v856_v47 = vrot.slane %v4488_v57, %v3709_v28 }
 0x160   :  { %v3131_v51 = vrot.slane %v3103_v49, %v3731_v35  ;;  %v860_v21 = vrot.slane %v4488_v57, %v3712_v29  ;;  %v864_v25 = vrot.slane %v4488_v57, %v3715_v30  ;;  %v868_v26 = vrot.slane %v4488_v57, %v3719_v31 }
 0x161   :  { %v3050_v36 = vcombine.low %v3042_v41, %v3049_v19  ;;  %v3132_v55 = vcombine.low %v3110_v48, %v3117_v39  ;;  %3323 = vperm.xlu1 %3498, %v4604_v59   ;;  %v872_v44 = vrot.slane %v4488_v57, %v3722_v32  ;;  %v876_v28 = vrot.slane %v4488_v57, %v3725_v33  ;;  %v1678_v27 = vpop.permute.xlu0 %1677  ;;  %v1675_v43 = vpop.permute.xlu1 %1674 }
 0x162   :  { %v3133_v53 = vcombine.low %v3124_v0, %v3131_v51  ;;  %v1612_v61 = vcombine.low %v848_v60, %v852_v14  ;;  %v1613_v11 = vcombine.low %v856_v47, %v860_v21  ;;  %v1614_v29 = vcombine.low %v864_v25, %v868_v26 }
 0x163   :  { %3332 = vperm.xlu0 %3499, %v3050_v36   ;;  %v3140_v30 = vrot.slane %v3132_v55, %v3731_v35  ;;  %v1615_v46 = vcombine.low %v872_v44, %v876_v28  ;;  %v4747_v31 = vsub.s32 %v4646_v58, %v3693_v20  ;;  %v1715_v59 = vadd.s32 4294967288, %v4646_v58 }
 0x164   :  { %v3147_v32 = vrot.slane %v3133_v53, %v3731_v35  ;;  %v1622_v33 = vrot.slane %v1612_v61, %v3731_v35  ;;  %v1629_v57 = vrot.slane %v1613_v11, %v3731_v35  ;;  %v1636_v4 = vrot.slane %v1614_v29, %v3731_v35 }
 0x165   :  { %3189 = vperm.xlu1 %3498, %v3050_v36   ;;  %v1643_v23 = vrot.slane %v1615_v46, %v3731_v35  ;;  %v1714_v50 = vrot.slane %v4696_v24, %v4747_v31  ;;  %v4758_v38 = vsub.s32 %v1715_v59, %v3693_v20  ;;  %vm1720_vm1 = vcmask 130112   ;;  %v1684_v37 = vpop.permute.xlu0 %1683 }
 0x166   :  { %v3148_v10 = vcombine.low %v3140_v30, %v3147_v32  ;;  %v1729_v18 = vadd.s32 4294967272, %v4646_v58  ;;  %v1722_v22 = vadd.s32 4294967280, %v4646_v58  ;;  %v1644_v52 = vcombine.low %v1622_v33, %v1629_v57 }
 0x167   :  { %3335 = vperm.xlu0 %3499, %v3099_v15   ;;  %v1645_v16 = vcombine.low %v1636_v4, %v1643_v23  ;;  %v1719_v12 = vrot.slane %v1666_v54, %v4758_v38  ;;  %v1743_v9 = vadd.s32 4294967256, %v4646_v58  ;;  %vm1727_vm2 = vcmask 195712  }
 0x168   :  { %v4765_v6 = vsub.s32 %v1729_v18, %v3693_v20  ;;  %v4768_v24 = vsub.s32 %v1722_v22, %v3693_v20  ;;  %v1736_v40 = vadd.s32 4294967264, %v4646_v58  ;;  %vm1734_vm3 = vcmask 261312  }
 0x169   :  { %3329 = vperm.xlu1 %3498, %v4664_v1   ;;  %v1721_v7 = vsel %vm1720_vm1, %v1719_v12, %v1714_v50  ;;  %v4773_v45 = vsub.s32 %v1743_v9, %v3693_v20  ;;  %v1757_v34 = vadd.s32 4294967240, %v4646_v58  ;;  %v1652_v2 = vrot.slane %v1644_v52, %v3731_v35 }
 0x16a   :  { %v1733_v62 = vrot.slane %v1672_v8, %v4765_v6  ;;  %v1726_v63 = vrot.slane %v1669_v42, %v4768_v24  ;;  %v1659_v1 = vrot.slane %v1645_v16, %v3731_v35  ;;  %v4782_v15 = vsub.s32 %v1736_v40, %v3693_v20  ;;  %v1690_v53 = vpop.permute.xlu0 %1689 }
 0x16b   :  { %3338 = vperm.xlu0 %3499, %v3148_v10   ;;  %vm1741_vm4 = vcmask 326912   ;;  %v1747_v5 = vrot.slane %v1678_v27, %v4773_v45  ;;  %v4787_v56 = vsub.s32 %v1757_v34, %v3693_v20  ;;  %v1750_v13 = vadd.s32 4294967248, %v4646_v58 }
 0x16c   :  { %v1728_v17 = vsel %vm1727_vm2, %v1726_v63, %v1721_v7  ;;  %v1740_v3 = vrot.slane %v1675_v43, %v4782_v15  ;;  %vm1748_vm5 = vcmask 392512   ;;  %v1660_v49 = vcombine.low %v1652_v2, %v1659_v1 }
 0x16d   :  { %3195 = vperm.xlu1 %3498, %v3148_v10   ;;  %v1735_v41 = vsel %vm1734_vm3, %v1733_v62, %v1728_v17  ;;  %v4793_v54 = vsub.s32 %v1750_v13, %v3693_v20  ;;  %v1761_v60 = vrot.slane %v1684_v37, %v4787_v56  ;;  %vm1755_vm6 = vcmask 458112  }
 0x16e   :  { %v1742_v48 = vsel %vm1741_vm4, %v1740_v3, %v1735_v41  ;;  %vm1762_vm7 = vcmask 523712   ;;  %v1764_v51 = vadd.s32 4294967232, %v4646_v58  ;;  %v1771_v25 = vadd.s32 4294967224, %v4646_v58 }
 0x16f   :  { %v1681_v14 = vpop.permute.xlu1 %1680  ;;  %v1749_v19 = vsel %vm1748_vm5, %v1747_v5, %v1742_v48  ;;  %vm1769_vm8 = vcmask 589312   ;;  %v1778_v44 = vadd.s32 4294967216, %v4646_v58  ;;  %vm1776_vm9 = vcmask 654912  }
 0x170   :  { %v1754_v39 = vrot.slane %v1681_v14, %v4793_v54  ;;  %v4803_v21 = vsub.s32 %v1764_v51, %v3693_v20  ;;  %v4810_v28 = vsub.s32 %v1771_v25, %v3693_v20  ;;  %v1785_v29 = vadd.s32 4294967208, %v4646_v58 }
 0x171   :  { %1707 = vperm.xlu1 %3498, %v1660_v49   ;;  %v4813_v61 = vsub.s32 %v1778_v44, %v3693_v20  ;;  %vm1783_vm10 = vcmask 720512   ;;  %v1792_v42 = vadd.s32 4294967200, %v4646_v58  ;;  %vm1790_vm11 = vcmask 786112  }
 0x172   :  { %v1756_v0 = vsel %vm1755_vm6, %v1754_v39, %v1749_v19  ;;  %v1775_v11 = vrot.slane %v1690_v53, %v4810_v28  ;;  %v4822_v32 = vsub.s32 %v1785_v29, %v3693_v20  ;;  %vm1797_vm12 = vcmask 851712  }
 0x173   :  { %v1763_v47 = vsel %vm1762_vm7, %v1761_v60, %v1756_v0  ;;  %v4825_v57 = vsub.s32 %v1792_v42, %v3693_v20  ;;  %v1799_v18 = vadd.s32 4294967192, %v4646_v58  ;;  %v1806_v52 = vadd.s32 4294967184, %v4646_v58 }
 0x174   :  { %vm1804_vm13 = vcmask 917312   ;;  %vm1811_vm14 = vcmask 982912   ;;  %vm1818_vm15 = vcmask 1048512  }
 0x175   :  { %v1696_v33 = vpop.permute.xlu0 %1695  ;;  %v4834_v16 = vsub.s32 %v1799_v18, %v3693_v20  ;;  %v4837_v9 = vsub.s32 %v1806_v52, %v3693_v20 }
 0x176   :  { %v1789_v4 = vrot.slane %v1696_v33, %v4822_v32 }
 0x17b   :  { %v1687_v26 = vpop.permute.xlu1 %1686 }
 0x17c   :  { %v1768_v36 = vrot.slane %v1687_v26, %v4803_v21 }
 0x17e   :  { %v1770_v55 = vsel %vm1769_vm8, %v1768_v36, %v1763_v47 }
 0x17f   :  { %v1777_v46 = vsel %vm1776_vm9, %v1775_v11, %v1770_v55 }
 0x180   :  { %v1702_v12 = vpop.permute.xlu0 %1701 }
 0x181   :  { %v1803_v27 = vrot.slane %v1702_v12, %v4834_v16 }
 0x185   :  { %v1693_v8 = vpop.permute.xlu1 %1692 }
 0x186   :  { %v1782_v30 = vrot.slane %v1693_v8, %v4813_v61 }
 0x188   :  { %v1784_v59 = vsel %vm1783_vm10, %v1782_v30, %v1777_v46 }
 0x189   :  { %v1791_v10 = vsel %vm1790_vm11, %v1789_v4, %v1784_v59 }
 0x18b   :  { %v3151_v43 = vpop.permute.xlu0 %3150 }
 0x18c   :  { %v3200_v44 = vrot.slane %v3151_v43, %v4747_v31 }
 0x190   :  { %v1699_v23 = vpop.permute.xlu1 %1698 }
 0x191   :  { %v1796_v50 = vrot.slane %v1699_v23, %v4825_v57 }
 0x193   :  { %v1798_v22 = vsel %vm1797_vm12, %v1796_v50, %v1791_v10 }
 0x194   :  { %v1805_v62 = vsel %vm1804_vm13, %v1803_v27, %v1798_v22 }
 0x195   :  { %v3163_v34 = vpop.permute.xlu0 %3162 }
 0x19a   :  { %v1705_v7 = vpop.permute.xlu1 %1704 }
 0x19b   :  { %v1810_v40 = vrot.slane %v1705_v7, %v4837_v9 }
 0x19d   :  { %v4843_v63 = vsel %vm1811_vm14, %v1810_v40, %v1805_v62 }
 0x1a0   :  { %v3303_v2 = vpop.permute.xlu0 %3302 }
 0x1a5   :  { %v3154_v1 = vpop.permute.xlu1 %3153 }
 0x1a6   :  { %v3204_v25 = vrot.slane %v3154_v1, %v4758_v38 }
 0x1a8   :  { %v3205_v30 = vsel %vm1720_vm1, %v3204_v25, %v3200_v44 }
 0x1aa   :  { %v3169_v17 = vpop.permute.xlu0 %3168 }
 0x1ab   :  { %v3229_v7 = vrot.slane %v3169_v17, %v4793_v54 }
 0x1af   :  { %v3157_v5 = vpop.permute.xlu1 %3156 }
 0x1b0   :  { %v3209_v26 = vrot.slane %v3157_v5, %v4768_v24 }
 0x1b2   :  { %v3210_v46 = vsel %vm1727_vm2, %v3209_v26, %v3205_v30 }
 0x1b3   :  { %v3160_v13 = vpop.permute.xlu1 %3159 }
 0x1b4   :  { %v3214_v53 = vrot.slane %v3160_v13, %v4765_v6 }
 0x1b5   :  { %v3309_v41 = vpop.permute.xlu0 %3308 }
 0x1b6   :  { %v3215_v42 = vsel %vm1734_vm3, %v3214_v53, %v3210_v46  ;;  %v3367_v40 = vrot.slane %v3309_v41, %v4773_v45 }
 0x1b7   :  { %v3294_v3 = vpop.permute.xlu1 %3293 }
 0x1b8   :  { %v3343_v29 = vrot.slane %v3294_v3, %v4747_v31  ;;  %v3357_v31 = vrot.slane %v3303_v2, %v4765_v6 }
 0x1ba   :  { %v3175_v37 = vpop.permute.xlu0 %3174 }
 0x1bb   :  { %v3297_v49 = vpop.permute.xlu1 %3296  ;;  %v3239_v13 = vrot.slane %v3175_v37, %v4803_v21 }
 0x1bc   :  { %v3347_v36 = vrot.slane %v3297_v49, %v4758_v38 }
 0x1be   :  { %v3348_v59 = vsel %vm1720_vm1, %v3347_v36, %v3343_v29  ;;  %vm3448_vm1 = vcmask 1040384  }
 0x1bf   :  { %v3300_v48 = vpop.permute.xlu1 %3299 }
 0x1c0   :  { %v3352_v11 = vrot.slane %v3300_v48, %v4768_v24  ;;  %v3219_v24 = vrot.slane %v3163_v34, %v4782_v15 }
 0x1c1   :  { %v3315_v60 = vpop.permute.xlu0 %3314 }
 0x1c2   :  { %v3353_v38 = vsel %vm1727_vm2, %v3352_v11, %v3348_v59  ;;  %v3220_v10 = vsel %vm1741_vm4, %v3219_v24, %v3215_v42  ;;  %vm73_vm2 = vcmask 0  }
 0x1c3   :  { %v3166_v14 = vpop.permute.xlu1 %3165  ;;  %v3358_v18 = vsel %vm1734_vm3, %v3357_v31, %v3353_v38 }
 0x1c4   :  { %v3224_v33 = vrot.slane %v3166_v14, %v4773_v45 }
 0x1c6   :  { %v3181_v19 = vpop.permute.xlu0 %3180  ;;  %v3225_v22 = vsel %vm1748_vm5, %v3224_v33, %v3220_v10 }
 0x1c7   :  { %v3306_v39 = vpop.permute.xlu1 %3305  ;;  %v3230_v6 = vsel %vm1755_vm6, %v3229_v7, %v3225_v22 }
 0x1c8   :  { %v3362_v4 = vrot.slane %v3306_v39, %v4782_v15 }
 0x1ca   :  { %v3363_v52 = vsel %vm1741_vm4, %v3362_v4, %v3358_v18  ;;  %v188_v4 = vld [vmem:[%s4933_s2] sm:$0x1]  ;;  %s3559_s2 = smov [#allocation2]  }
 0x1cb   :  { %v3172_v47 = vpop.permute.xlu1 %3171  ;;  %v3368_v62 = vsel %vm1748_vm5, %v3367_v40, %v3363_v52  ;;  %s3469_s22 = sshll.u32 %s3559_s2, 4  ;;  %s3470_s22 = int_to_ptr.vmem [resolvable:$true] %s3469_s22 }
 0x1cc   :  { %v3321_v0 = vpop.permute.xlu0 %3320  ;;  %v3234_v12 = vrot.slane %v3172_v47, %v4787_v56  ;;  %v3249_v47 = vrot.slane %v3181_v19, %v4813_v61  ;;  %s3532_s24 = scalar_lea.vmem %s3470_s22, 16  ;;  %s3536_s25 = scalar_lea.vmem %s3470_s22, 32 }
 0x1cd   :  { %p3533_p0 = scmp.ne.s32.totalorder %s3470_s22, %s3532_s24  ;;  %p3537_p1 = scmp.lt.s32.totalorder %s3470_s22, %s3470_s22 }
 0x1ce   :  { %v3235_v34 = vsel %vm1762_vm7, %v3234_v12, %v3230_v6  ;;  %p3538_p2 = scmp.lt.s32.totalorder %s3536_s25, %s3532_s24 }
 0x1cf   :  { %v3312_v51 = vpop.permute.xlu1 %3311  ;;  %v3240_v45 = vsel %vm1769_vm8, %v3239_v13, %v3235_v34 }
 0x1d0   :  { %v3372_v27 = vrot.slane %v3312_v51, %v4793_v54  ;;  %v3377_v54 = vrot.slane %v3315_v60, %v4787_v56  ;;  %v1813_v56 = vadd.s32 4294967176, %v4646_v58  ;;  %p3539_p3 = por %p3538_p2, %p3537_p1 }
 0x1d2   :  { %v3187_v55 = vpop.permute.xlu0 %3186  ;;  %v3373_v2 = vsel %vm1755_vm6, %v3372_v27, %v3368_v62  ;;  %v3441_v27 = vmul.u32 128, %v3693_v20  ;;  %p3540_p4 = pnand %p3539_p3, %p3533_p0 }
 0x1d3   :  { %v3178_v8 = vpop.permute.xlu1 %3177  ;;  %v3378_v3 = vsel %vm1762_vm7, %v3377_v54, %v3373_v2  ;;  %v3259_v53 = vrot.slane %v3187_v55, %v4825_v57 }
 0x1d4   :  { %v3244_v1 = vrot.slane %v3178_v8, %v4810_v28  ;;  %v3444_v6 = vadd.s32 %v3441_v27, %v4646_v58 }
 0x1d6   :  { %v3245_v49 = vsel %vm1776_vm9, %v3244_v1, %v3240_v45  ;;  %vm3445_vm0 = vcmp.lt.s32.totalorder %v3444_v6, 16 }
 0x1d7   :  { %v3327_v23 = vpop.permute.xlu0 %3326  ;;  %v3250_v51 = vsel %vm1783_vm10, %v3249_v47, %v3245_v49 }
 0x1d8   :  { %v3318_v50 = vpop.permute.xlu1 %3317 }
 0x1d9   :  { %v3382_v5 = vrot.slane %v3318_v50, %v4803_v21  ;;  %v3387_v21 = vrot.slane %v3321_v0, %v4810_v28  ;;  %v1816_v28 = vsub.s32 %v1813_v56, %v3693_v20  ;;  %v3558_v20 = vmov 0.0  }
 0x1da   :  { %74 = vst.msk [vmem:[#allocation2] sm:$0x1] %vm73_vm2, %v3558_v20 }
 0x1db   :  { %v3383_v48 = vsel %vm1769_vm8, %v3382_v5, %v3378_v3 }
 0x1dc   :  { %v3184_v15 = vpop.permute.xlu1 %3183  ;;  %v3388_v25 = vsel %vm1776_vm9, %v3387_v21, %v3383_v48 }
 0x1dd   :  { %v3193_v43 = vpop.permute.xlu0 %3192  ;;  %v3254_v14 = vrot.slane %v3184_v15, %v4822_v32 }
 0x1df   :  { %v3255_v26 = vsel %vm1790_vm11, %v3254_v14, %v3250_v51 }
 0x1e0   :  { %v3324_v17 = vpop.permute.xlu1 %3323  ;;  %v3260_v8 = vsel %vm1797_vm12, %v3259_v53, %v3255_v26 }
 0x1e1   :  { %v3392_v39 = vrot.slane %v3324_v17, %v4813_v61  ;;  %v3397_v61 = vrot.slane %v3327_v23, %v4822_v32  ;;  %v3269_v32 = vrot.slane %v3193_v43, %v4837_v9  ;;  %v3447_v3 = vld [vmem:[#allocation2] sm:$0x1] }
 0x1e2   :  { %v3333_v41 = vpop.permute.xlu0 %3332 }
 0x1e3   :  { %v3393_v36 = vsel %vm1783_vm10, %v3392_v39, %v3388_v25  ;;  %v3407_v11 = vrot.slane %v3333_v41, %v4834_v16 }
 0x1e4   :  { %v3190_v37 = vpop.permute.xlu1 %3189  ;;  %v3398_v30 = vsel %vm1790_vm11, %v3397_v61, %v3393_v36 }
 0x1e5   :  { %v3264_v44 = vrot.slane %v3190_v37, %v4834_v16 }
 0x1e6   :  { %v3336_v60 = vpop.permute.xlu0 %3335 }
 0x1e7   :  { %v3412_v46 = vrot.slane %v3336_v60, %v4837_v9  ;;  %v3265_v59 = vsel %vm1804_vm13, %v3264_v44, %v3260_v8  ;;  %v1836_v9 = vsub.f32 1.0, %v188_v4 }
 0x1e8   :  { %v3330_v19 = vpop.permute.xlu1 %3329  ;;  %v3270_v23 = vsel %vm1811_vm14, %v3269_v32, %v3265_v59 }
 0x1e9   :  { %v3402_v0 = vrot.slane %v3330_v19, %v4825_v57 }
 0x1ea   :  { %v3339_v29 = vpop.permute.xlu0 %3338 }
 0x1eb   :  { %v3403_v55 = vsel %vm1797_vm12, %v3402_v0, %v3398_v30  ;;  %v3417_v57 = vrot.slane %v3339_v29, %v1816_v28 }
 0x1ec   :  { %v3408_v42 = vsel %vm1804_vm13, %v3407_v11, %v3403_v55  ;;  %v3196_v38 = vpop.permute.xlu1 %3195 }
 0x1ed   :  { %v3413_v16 = vsel %vm1811_vm14, %v3412_v46, %v3408_v42  ;;  %v3274_v33 = vrot.slane %v3196_v38, %v1816_v28 }
 0x1ee   :  { %v3418_v31 = vsel %vm1818_vm15, %v3417_v57, %v3413_v16 }
 0x1ef   :  { %v3275_v24 = vsel %vm1818_vm15, %v3274_v33, %v3270_v23  ;;  %v3425_v52 = vrot.slane %v3418_v31, %v3731_v35 }
 0x1f0   :  { %v3282_v50 = vrot.slane %v3275_v24, %v3731_v35  ;;  %v1708_v10 = vpop.permute.xlu1 %1707 }
 0x1f1   :  { %v1817_v18 = vrot.slane %v1708_v10, %v1816_v28  ;;  %v3432_v43 = vrot.slane %v3425_v52, %v3731_v35 }
 0x1f2   :  { %v3289_v22 = vrot.slane %v3282_v50, %v3731_v35 }
 0x1f3   :  { %v1819_v12 = vsel %vm1818_vm15, %v1817_v18, %v4843_v63 }
 0x1f4   :  { %v1826_v7 = vrot.slane %v1819_v12, %v3731_v35  ;;  %v3291_v40 = vmul.f32 %v3289_v22, %v1836_v9 }
 0x1f6   :  { %v1833_v15 = vrot.slane %v1826_v7, %v3731_v35  ;;  %v3434_v34 = vmul.f32 %v3432_v43, %v3291_v40 }
 0x1f8   :  { %v1835_v62 = vmul.f32 %v1833_v15, %v188_v4 }
 0x1fa   :  { %v3435_v2 = vadd.f32 %v3434_v34, %v1835_v62 }
 0x1fc   :  { %v3436_v1 = vmul.f32 0.5, %v3435_v2 }
 0x1fe   :  { %v3446_v5 = vsel %vm3445_vm0, %v3436_v1, 0.0 }
 0x1ff   :  { %v3449_v13 = vsel %vm3448_vm1, %v3446_v5, 0.0 }
 0x200   :  { %3450 = vadd.xlane.f32.xlu1 %v3449_v13 }
 0x28d   :  { %v3451_v63 = vpop.xlane.xlu1 %3450 }
 0x28e   :  { %v3452_v54 = vrot.slane %v3451_v63, 4 }
 0x290   :  { %v3453_v17 = vadd.f32 %v3452_v54, %v3451_v63 }
 0x292   :  { %v3454_v45 = vrot.slane %v3453_v17, 2 }
 0x294   :  { %v3455_v35 = vadd.f32 %v3454_v45, %v3453_v17 }
 0x296   :  { %v3456_v41 = vrot.slane %v3455_v35, 1 }
 0x298   :  { %v3457_v58 = vadd.f32 %v3456_v41, %v3455_v35 }
 0x29a   :  { %3492 = vpush %v3457_v58 }
 0x2cb   :  { %s3493_s23 = spop %3492 }
 0x2cc   :  { %v3459_v49 = vstv %s3493_s23 }
 0x2cd   :  { %v3460_v48 = vadd.f32 %v3459_v49, %v3447_v3 }
 0x2cf   :  { %3462 = vst.msk [vmem:[#allocation2] sm:$0x1] %vm73_vm2, %v3460_v48 }
 0x2d0   :  { %3543 = shalt.err (!%p3540_p4)
}
 0x2d1   :  { %s3544_s28 = scalar_lea.hbm %s4934_s3, 16 }
 0x2d2   :  { %p3545_p5 = scmp.ne.s32.totalorder %s4934_s3, %s3544_s28  ;;  %p3548_p6 = scmp.lt.u32.totalorder %s3544_s28, %s4934_s3 }
 0x2d4   :  { %p3550_p7 = pnand %p3548_p6, %p3545_p5 }
 0x2d6   :  { %3553 = shalt.err (!%p3550_p7)
}
 0x2d7   :  { %3472 = dma.vmem_to_hbm [thread:$0]  %s3470_s22, 16, %s4934_s3, [#allocation3]  }
 0x2d8   :  { %3554 = dma.done.wait [#allocation3], 16  }
 0x2d9   :  { %3555 = vsyncadd [#allocation3], 4294967280 }
 0x2da   :  { %3476 = vsyncpa [#allocation3], 1 }

</bundles_post_ra>
